<compile_context>
chip_gen: v7x
topology: tpu7x:2x2x1
jax: 0.10.0
libtpu: 0.0.40
codegen_flags: <defaults>
</compile_context>

<pallas_src>
import functools

import jax
import jax.numpy as jnp
from jax.experimental import pallas as pl
from jax.experimental.pallas import tpu as pltpu


# ----------------------------- in-kernel helpers -----------------------------

def _elu(x):
    # Exact F.elu (alpha=1): x if x > 0 else exp(x) - 1.
    return jnp.where(x > 0, x, jnp.exp(jnp.minimum(x, 0.0)) - 1.0)


def _bf16_dot(w, a):
    # bf16 operands on the MXU, f32 accumulation.
    return jnp.dot(w.astype(jnp.bfloat16), a.astype(jnp.bfloat16),
                   preferred_element_type=jnp.float32)


# ------------------------------- fused kernel -------------------------------

def _pixelsnail_kernel(x_ref, img_ref,
                       w1_ref, b1_ref, w2_ref, b2_ref,
                       wq_ref, bq_ref, wkvx_ref, wkve_ref, bkv_ref,
                       wr_ref, br_ref, wa_ref, ba_ref, wo_ref, bo_ref,
                       o_ref, *,
                       height, width, n_blocks, n_channels, key_channels):
    """Whole PixelSNAILBlock for one batch element, channels-major (C, HW)."""
    c = n_channels
    hw = height * width
    x = x_ref[0]                                     # (C, HW)  f32
    img = img_ref[0]                                 # (1, HW)  f32

    # Column (x >= 1) mask used by the causal-conv taps that shift in x.
    col = jax.lax.broadcasted_iota(jnp.int32, (1, hw), 1)
    not_first_col = (col % width) >= 1               # (1, HW) bool

    # Lane-aligned zero-pad width for the tap slices (>= width + 1).
    pad = ((width + 1 + 127) // 128) * 128

    def causal_conv2x2(a, w, b):
        # 2x2 conv, padding=1, crop [:h, :w]  ==  sum over taps (dy, dx) of
        # a(y - dy, x - dx).  All four taps are built in-VMEM and fused into
        # ONE (Cout, 4C) x (4C, HW) MXU dot.  Tap order along the 4C axis is
        # (dy, dx) = (1,1), (1,0), (0,1), (0,0)  <->  PyTorch (kh, kw) =
        # (0,0), (0,1), (1,0), (1,1).
        zpad = jnp.zeros((a.shape[0], pad), a.dtype)
        a_pad = jnp.concatenate([zpad, a], axis=1)   # aligned lane concat

        def tap(s):                                  # t[:, i] = a[:, i - s], 0 if i < s
            return a_pad[:, pad - s: pad - s + hw]

        t11 = jnp.where(not_first_col, tap(width + 1), 0.0)   # (y-1, x-1)
        t10 = tap(width)                                       # (y-1, x  )
        t01 = jnp.where(not_first_col, tap(1), 0.0)            # (y  , x-1)
        slab = jnp.concatenate([t11, t10, t01, a], axis=0)     # (4C, HW)
        return _bf16_dot(w, slab) + b

    # ---------------- residual blocks (fused, weights stacked) ----------------
    res = x
    for blk in range(n_blocks):
        h1 = _elu(causal_conv2x2(_elu(res), w1_ref[blk], b1_ref[blk]))
        ug = causal_conv2x2(h1, w2_ref[blk], b2_ref[blk])      # (2C, HW) = u || gate
        res = res + ug[:c] * jax.nn.sigmoid(ug[c:])

    # ------------ masked attention (fused q / kv 1x1 projections) ------------
    scale = 1.0 / (key_channels ** 0.5)
    q = (_bf16_dot(wq_ref[...], res) + bq_ref[...]) * scale     # (K, HW), pre-scaled
    kv = (_bf16_dot(wkvx_ref[...], res)
          + wkve_ref[...] * img + bkv_ref[...])                 # (K+V, HW)
    k = kv[:key_channels]
    v = kv[key_channels:]

    # scores[i, j] = <q[:, i], k[:, j]>  (already 1/sqrt(K)-scaled)
    s = jax.lax.dot_general(q.astype(jnp.bfloat16), k.astype(jnp.bfloat16),
                            (((0,), (0,)), ((), ())),
                            preferred_element_type=jnp.float32)  # (HW, HW)
    rows = jax.lax.broadcasted_iota(jnp.int32, (hw, hw), 0)
    cols = jax.lax.broadcasted_iota(jnp.int32, (hw, hw), 1)
    causal = cols < rows                              # strictly lower triangular
    # Unmasked row max is still a valid upper bound, so the reference's
    # pre-max masked-fill pass is dropped; masked probs are zeroed below.
    p = jnp.exp(s - jnp.max(s, axis=-1, keepdims=True))
    p = jnp.where(causal, p, 0.0)
    denom = jnp.sum(p, axis=-1, keepdims=True) + 1e-6
    p = p * pl.reciprocal(denom, approx=True)
    # TODO(synk): for HW >~ 2048 switch this dense (HW, HW) path to flash-style
    # q-row tiling (online softmax, k/v VMEM-resident): the score temporaries
    # exceed v7x's 64 MiB VMEM and v5e/v6e's default scoped limits.
    attn = jax.lax.dot_general(v.astype(jnp.bfloat16), p.astype(jnp.bfloat16),
                               (((1,), (1,)), ((), ())),
                               preferred_element_type=jnp.float32)  # (V, HW)

    # --------------------------- output tail (fused) ---------------------------
    r = _elu(_bf16_dot(wr_ref[...], _elu(res)) + br_ref[...])
    a = _elu(_bf16_dot(wa_ref[...], _elu(attn)) + ba_ref[...])
    o_ref[0] = _elu(_bf16_dot(wo_ref[...], _elu(r + a)) + bo_ref[...])


# ------------------------------- kernel wrapper -------------------------------

def pixelsnail_block(params, x, input_img, *, key_channels, value_channels):
    del value_channels  # implied by the kv weight shape
    n, c, h, w = x.shape
    hw = h * w
    x_t = x.reshape(n, c, hw)              # channels-major slabs (free reshape)
    img_t = input_img.reshape(n, 1, hw)

    wkv = params["wkv"]
    weights = [
        params["w1"], params["b1"], params["w2"], params["b2"],
        params["wq"], params["bq"],
        wkv[:, :c], wkv[:, c:], params["bkv"],   # kv conv split: x rows | img row
        params["wr"], params["br"],
        params["wa"], params["ba"],
        params["wo"], params["bo"],
    ]
    n_blocks = params["w1"].shape[0]

    kernel = functools.partial(
        _pixelsnail_kernel, height=h, width=w, n_blocks=n_blocks,
        n_channels=c, key_channels=key_channels)

    act_spec = pl.BlockSpec((1, c, hw), lambda b: (b, 0, 0))
    img_spec = pl.BlockSpec((1, 1, hw), lambda b: (b, 0, 0))
    # Weights: full-shape blocks with constant index maps -> fetched once and
    # VMEM-resident across the (parallel) batch grid.
    # TODO(synk): pipeline_mode=pl.Buffered(1) on these specs would halve their
    # VMEM footprint (they never change across grid steps).
    w_specs = [pl.BlockSpec(wt.shape, lambda b, nd=wt.ndim: (0,) * nd)
               for wt in weights]

    out = pl.pallas_call(
        kernel,
        out_shape=jax.ShapeDtypeStruct((n, c, hw), jnp.float32),
        grid_spec=pltpu.PrefetchScalarGridSpec(
            num_scalar_prefetch=0,
            grid=(n,),
            in_specs=[act_spec, img_spec] + w_specs,
            out_specs=pl.BlockSpec((1, c, hw), lambda b: (b, 0, 0)),
        ),
        compiler_params=pltpu.CompilerParams(
            dimension_semantics=("parallel",)),
    )(x_t, img_t, *weights)
    return out.reshape(n, c, h, w)


# ------------------------------- params -------------------------------

def init_params(key, n_channels, n_blocks, key_channels, value_channels,
                scale=0.1):
    c = n_channels
    keys = iter(jax.random.split(key, 64))

    def rnd(shape):
        return scale * jax.random.normal(next(keys), shape, jnp.float32)

    def fuse_conv2x2(w_oihw):
        # PyTorch (Cout, Cin, 2, 2) -> fused (Cout, 4*Cin); tap order along 4C
        # is (kh, kw) = (0,0), (0,1), (1,0), (1,1)  == (dy, dx) = (1,1)..(0,0).
        return jnp.concatenate([w_oihw[:, :, 0, 0], w_oihw[:, :, 0, 1],
                                w_oihw[:, :, 1, 0], w_oihw[:, :, 1, 1]], axis=1)

    w1 = jnp.stack([fuse_conv2x2(rnd((c, c, 2, 2))) for _ in range(n_blocks)])
    b1 = jnp.stack([rnd((c, 1)) for _ in range(n_blocks)])
    w2 = jnp.stack([fuse_conv2x2(rnd((2 * c, c, 2, 2))) for _ in range(n_blocks)])
    b2 = jnp.stack([rnd((2 * c, 1)) for _ in range(n_blocks)])

    params = dict(
        w1=w1, b1=b1, w2=w2, b2=b2,
        wq=rnd((key_channels, c)), bq=rnd((key_channels, 1)),
        wkv=rnd((key_channels + value_channels, c + 1)),
        bkv=rnd((key_channels + value_channels, 1)),
        wr=rnd((c, c)), br=rnd((c, 1)),
        wa=rnd((c, value_channels)), ba=rnd((c, 1)),
        wo=rnd((c, c)), bo=rnd((c, 1)),
    )
    # Weights in bf16 (halves HBM/VMEM traffic, 2x MXU rate); biases stay f32.
    for name in ("w1", "w2", "wq", "wkv", "wr", "wa", "wo"):
        params[name] = params[name].astype(jnp.bfloat16)
    return params


# ---------------------- pure-JAX reference (PyTorch math) ----------------------

def _ref_forward(params, x, input_img, *, key_channels):
    f32 = lambda arr: arr.astype(jnp.float32)
    n, c, h, w = x.shape
    hw = h * w
    n_blocks = params["w1"].shape[0]

    def elu(v):
        return jnp.where(v > 0, v, jnp.exp(jnp.minimum(v, 0.0)) - 1.0)

    def conv2x2(a, wf, b):      # causal 2x2 conv (pad=1, crop), fused-tap weights
        taps = []
        for dy in (1, 0):
            for dx in (1, 0):
                taps.append(jnp.pad(a, ((0, 0), (0, 0), (dy, 0), (dx, 0)))[:, :, :h, :w])
        slab = jnp.concatenate(taps, axis=1)
        return jnp.einsum('oc,nchw->nohw', f32(wf), slab) + b.reshape(1, -1, 1, 1)

    def conv1x1(a, wf, b):
        return jnp.einsum('oc,nchw->nohw', f32(wf), a) + b.reshape(1, -1, 1, 1)

    res = x
    for blk in range(n_blocks):
        h1 = elu(conv2x2(elu(res), params["w1"][blk], params["b1"][blk]))
        ug = conv2x2(h1, params["w2"][blk], params["b2"][blk])
        res = res + ug[:, :c] * jax.nn.sigmoid(ug[:, c:])

    q = conv1x1(res, params["wq"], params["bq"]).reshape(n, key_channels, hw)
    xin = jnp.concatenate([res, input_img], axis=1)
    kv = conv1x1(xin, params["wkv"], params["bkv"]).reshape(n, -1, hw)
    k, v = kv[:, :key_channels], kv[:, key_channels:]
    mask = jnp.tril(jnp.ones((hw, hw), jnp.float32), k=-1)
    probs = jnp.einsum('nki,nkj->nij', q, k) - (1.0 - mask) * 1e10
    probs = probs - probs.max(axis=-1, keepdims=True)
    probs = jnp.exp(probs / (key_channels ** 0.5)) * mask
    probs = probs / (probs.sum(axis=-1, keepdims=True) + 1e-6)
    attn = jnp.einsum('nvj,nij->nvi', v, probs).reshape(n, -1, h, w)

    r = elu(conv1x1(elu(res), params["wr"], params["br"]))
    a = elu(conv1x1(elu(attn), params["wa"], params["ba"]))
    return elu(conv1x1(elu(r + a), params["wo"], params["bo"]))


# ------------------------------- main -------------------------------

if __name__ == "__main__":
    n_channels = 8
    n_residual_blocks = 2
    attention_key_channels = 16
    attention_value_channels = 16
    N, H, W = 2, 16, 16

    root = jax.random.PRNGKey(0)
    k_params, k_x, k_img = jax.random.split(root, 3)
    params = init_params(k_params, n_channels, n_residual_blocks,
                         attention_key_channels, attention_value_channels)

    x = jax.random.normal(k_x, (N, n_channels, H, W), jnp.float32)
    input_img = jax.random.normal(k_img, (N, 1, H, W), jnp.float32)

    fwd = jax.jit(functools.partial(
        pixelsnail_block,
        key_channels=attention_key_channels,
        value_channels=attention_value_channels,
    ))
    out = fwd(params, x, input_img)
    jax.block_until_ready(out)

    assert out.shape == (N, n_channels, H, W)
    assert bool(jnp.all(jnp.isfinite(out)))

    # Correctness: fused bf16-at-dot kernel vs pure-f32 PyTorch-math reference.
    ref = _ref_forward(params, x, input_img, key_channels=attention_key_channels)
    max_err = float(jnp.max(jnp.abs(out - ref)))
    assert max_err < 3e-2, f"max abs error vs reference: {max_err}"

    print("KERNEL_OK")
</pallas_src>

<mosaic_0001>
module attributes {stable_mosaic.version = 11 : i64} {
  func.func @_pixelsnail_kernel(%arg0: i32, %arg1: memref<1x8x256xf32, #tpu.memory_space<vmem>>, %arg2: memref<1x1x256xf32, #tpu.memory_space<vmem>>, %arg3: memref<2x8x32xbf16, #tpu.memory_space<vmem>>, %arg4: memref<2x8x1xf32, #tpu.memory_space<vmem>>, %arg5: memref<2x16x32xbf16, #tpu.memory_space<vmem>>, %arg6: memref<2x16x1xf32, #tpu.memory_space<vmem>>, %arg7: memref<16x8xbf16, #tpu.memory_space<vmem>>, %arg8: memref<16x1xf32, #tpu.memory_space<vmem>>, %arg9: memref<32x8xbf16, #tpu.memory_space<vmem>>, %arg10: memref<32x1xbf16, #tpu.memory_space<vmem>>, %arg11: memref<32x1xf32, #tpu.memory_space<vmem>>, %arg12: memref<8x8xbf16, #tpu.memory_space<vmem>>, %arg13: memref<8x1xf32, #tpu.memory_space<vmem>>, %arg14: memref<8x16xbf16, #tpu.memory_space<vmem>>, %arg15: memref<8x1xf32, #tpu.memory_space<vmem>>, %arg16: memref<8x8xbf16, #tpu.memory_space<vmem>>, %arg17: memref<8x1xf32, #tpu.memory_space<vmem>>, %arg18: memref<1x8x256xf32, #tpu.memory_space<vmem>>) attributes {dimension_semantics = [#tpu.dimension_semantics<parallel>], iteration_bounds = array<i64: 2>, scalar_prefetch = 0 : i64, scratch_operands = 0 : i64, tpu.core_type = #tpu.core_type<tc>, window_params = [{transform_indices = @transform_0, window_bounds = array<i64: 1, 8, 256>}, {transform_indices = @transform_1, window_bounds = array<i64: 1, 1, 256>}, {pipeline_mode = #tpu.pipeline_mode<synchronous>, transform_indices = @transform_2, window_bounds = array<i64: 2, 8, 32>}, {pipeline_mode = #tpu.pipeline_mode<synchronous>, transform_indices = @transform_3, window_bounds = array<i64: 2, 8, 1>}, {pipeline_mode = #tpu.pipeline_mode<synchronous>, transform_indices = @transform_4, window_bounds = array<i64: 2, 16, 32>}, {pipeline_mode = #tpu.pipeline_mode<synchronous>, transform_indices = @transform_5, window_bounds = array<i64: 2, 16, 1>}, {pipeline_mode = #tpu.pipeline_mode<synchronous>, transform_indices = @transform_6, window_bounds = array<i64: 16, 8>}, {pipeline_mode = #tpu.pipeline_mode<synchronous>, transform_indices = @transform_7, window_bounds = array<i64: 16, 1>}, {pipeline_mode = #tpu.pipeline_mode<synchronous>, transform_indices = @transform_8, window_bounds = array<i64: 32, 8>}, {pipeline_mode = #tpu.pipeline_mode<synchronous>, transform_indices = @transform_9, window_bounds = array<i64: 32, 1>}, {pipeline_mode = #tpu.pipeline_mode<synchronous>, transform_indices = @transform_10, window_bounds = array<i64: 32, 1>}, {pipeline_mode = #tpu.pipeline_mode<synchronous>, transform_indices = @transform_11, window_bounds = array<i64: 8, 8>}, {pipeline_mode = #tpu.pipeline_mode<synchronous>, transform_indices = @transform_12, window_bounds = array<i64: 8, 1>}, {pipeline_mode = #tpu.pipeline_mode<synchronous>, transform_indices = @transform_13, window_bounds = array<i64: 8, 16>}, {pipeline_mode = #tpu.pipeline_mode<synchronous>, transform_indices = @transform_14, window_bounds = array<i64: 8, 1>}, {pipeline_mode = #tpu.pipeline_mode<synchronous>, transform_indices = @transform_15, window_bounds = array<i64: 8, 8>}, {pipeline_mode = #tpu.pipeline_mode<synchronous>, transform_indices = @transform_16, window_bounds = array<i64: 8, 1>}, {transform_indices = @transform_17, window_bounds = array<i64: 1, 8, 256>}]} {
    %c0 = arith.constant 0 : index
    %c0_0 = arith.constant 0 : index
    %c0_1 = arith.constant 0 : index
    %0 = vector.load %arg1[%c0, %c0_0, %c0_1] : memref<1x8x256xf32, #tpu.memory_space<vmem>>, vector<1x8x256xf32>
    %1 = vector.shape_cast %0 : vector<1x8x256xf32> to vector<8x256xf32>
    %c0_2 = arith.constant 0 : index
    %c0_3 = arith.constant 0 : index
    %c0_4 = arith.constant 0 : index
    %2 = vector.load %arg2[%c0_2, %c0_3, %c0_4] : memref<1x1x256xf32, #tpu.memory_space<vmem>>, vector<1x1x256xf32>
    %3 = vector.shape_cast %2 : vector<1x1x256xf32> to vector<1x256xf32>
    %4 = tpu.iota {dimensions = array<i32: 1>} : vector<1x256xi32>
    %c16_i32 = arith.constant 16 : i32
    %c0_i32 = arith.constant 0 : i32
    %5 = arith.cmpi eq, %c16_i32, %c0_i32 : i32
    %c1_i32 = arith.constant 1 : i32
    %6 = arith.select %5, %c1_i32, %c16_i32 : i32
    %7 = vector.broadcast %6 : i32 to vector<1x256xi32>
    %8 = arith.remsi %4, %7 : vector<1x256xi32>
    %c0_i32_5 = arith.constant 0 : i32
    %9 = vector.broadcast %c0_i32_5 : i32 to vector<1x256xi32>
    %10 = arith.cmpi ne, %8, %9 : vector<1x256xi32>
    %c0_i32_6 = arith.constant 0 : i32
    %11 = vector.broadcast %c0_i32_6 : i32 to vector<1x256xi32>
    %12 = arith.cmpi slt, %8, %11 : vector<1x256xi32>
    %c0_i32_7 = arith.constant 0 : i32
    %13 = arith.cmpi slt, %6, %c0_i32_7 : i32
    %14 = vector.broadcast %13 : i1 to vector<1x256xi1>
    %15 = vector.broadcast %14 : vector<1x256xi1> to vector<1x256xi1>
    %16 = arith.xori %12, %15 : vector<1x256xi1>
    %17 = arith.andi %16, %10 : vector<1x256xi1>
    %18 = vector.broadcast %6 : i32 to vector<1x256xi32>
    %19 = arith.addi %8, %18 : vector<1x256xi32>
    %20 = arith.select %17, %19, %8 : vector<1x256xi1>, vector<1x256xi32>
    %c1_i32_8 = arith.constant 1 : i32
    %21 = vector.broadcast %c1_i32_8 : i32 to vector<1x256xi32>
    %22 = arith.cmpi sge, %20, %21 : vector<1x256xi32>
    %cst = arith.constant 0.000000e+00 : f32
    %23 = vector.broadcast %cst : f32 to vector<8x256xf32>
    %24 = arith.cmpf ogt, %1, %23 : vector<8x256xf32>
    %cst_9 = arith.constant 0.000000e+00 : f32
    %25 = vector.broadcast %cst_9 : f32 to vector<8x256xf32>
    %26 = arith.minimumf %1, %25 : vector<8x256xf32>
    %27 = math.exp %26 : vector<8x256xf32>
    %cst_10 = arith.constant 1.000000e+00 : f32
    %28 = vector.broadcast %cst_10 : f32 to vector<8x256xf32>
    %29 = arith.subf %27, %28 : vector<8x256xf32>
    %30 = arith.select %24, %1, %29 : vector<8x256xi1>, vector<8x256xf32>
    %c0_11 = arith.constant 0 : index
    %c0_12 = arith.constant 0 : index
    %c0_13 = arith.constant 0 : index
    %31 = vector.load %arg3[%c0_11, %c0_12, %c0_13] : memref<2x8x32xbf16, #tpu.memory_space<vmem>>, vector<1x8x32xbf16>
    %32 = vector.shape_cast %31 : vector<1x8x32xbf16> to vector<8x32xbf16>
    %c0_14 = arith.constant 0 : index
    %c0_15 = arith.constant 0 : index
    %c0_16 = arith.constant 0 : index
    %33 = vector.load %arg4[%c0_14, %c0_15, %c0_16] : memref<2x8x1xf32, #tpu.memory_space<vmem>>, vector<1x8x1xf32>
    %34 = vector.shape_cast %33 : vector<1x8x1xf32> to vector<8x1xf32>
    %cst_17 = arith.constant 0.000000e+00 : f32
    %35 = vector.broadcast %cst_17 : f32 to vector<8x128xf32>
    %36 = tpu.concatenate %35, %30 in 1 : vector<8x128xf32>, vector<8x256xf32> -> vector<8x384xf32>
    %37 = vector.extract_strided_slice %36 {offsets = [0, 111], sizes = [8, 256], strides = [1, 1]} : vector<8x384xf32> to vector<8x256xf32>
    %cst_18 = arith.constant 0.000000e+00 : f32
    %38 = vector.shape_cast %22 : vector<1x256xi1> to vector<1x256xi1>
    %39 = vector.broadcast %38 : vector<1x256xi1> to vector<8x256xi1>
    %40 = vector.broadcast %cst_18 : f32 to vector<8x256xf32>
    %41 = arith.select %39, %37, %40 : vector<8x256xi1>, vector<8x256xf32>
    %42 = vector.extract_strided_slice %36 {offsets = [0, 112], sizes = [8, 256], strides = [1, 1]} : vector<8x384xf32> to vector<8x256xf32>
    %43 = vector.extract_strided_slice %36 {offsets = [0, 127], sizes = [8, 256], strides = [1, 1]} : vector<8x384xf32> to vector<8x256xf32>
    %cst_19 = arith.constant 0.000000e+00 : f32
    %44 = vector.shape_cast %22 : vector<1x256xi1> to vector<1x256xi1>
    %45 = vector.broadcast %44 : vector<1x256xi1> to vector<8x256xi1>
    %46 = vector.broadcast %cst_19 : f32 to vector<8x256xf32>
    %47 = arith.select %45, %43, %46 : vector<8x256xi1>, vector<8x256xf32>
    %48 = tpu.concatenate %41, %42, %47, %30 in 0 : vector<8x256xf32>, vector<8x256xf32>, vector<8x256xf32>, vector<8x256xf32> -> vector<32x256xf32>
    %49 = arith.truncf %48 : vector<32x256xf32> to vector<32x256xbf16>
    %cst_20 = arith.constant dense<0.000000e+00> : vector<8x256xf32>
    %50 = tpu.matmul %32, %49, %cst_20 {dimension_numbers = #tpu.dot_dimension_numbers<[1], [0], [0], [1], [0, 0, 1, 1], [], []>} : vector<8x32xbf16>, vector<32x256xbf16>, vector<8x256xf32> -> vector<8x256xf32>
    %51 = vector.broadcast %34 : vector<8x1xf32> to vector<8x256xf32>
    %52 = arith.addf %50, %51 : vector<8x256xf32>
    %cst_21 = arith.constant 0.000000e+00 : f32
    %53 = vector.broadcast %cst_21 : f32 to vector<8x256xf32>
    %54 = arith.cmpf ogt, %52, %53 : vector<8x256xf32>
    %cst_22 = arith.constant 0.000000e+00 : f32
    %55 = vector.broadcast %cst_22 : f32 to vector<8x256xf32>
    %56 = arith.minimumf %52, %55 : vector<8x256xf32>
    %57 = math.exp %56 : vector<8x256xf32>
    %cst_23 = arith.constant 1.000000e+00 : f32
    %58 = vector.broadcast %cst_23 : f32 to vector<8x256xf32>
    %59 = arith.subf %57, %58 : vector<8x256xf32>
    %60 = arith.select %54, %52, %59 : vector<8x256xi1>, vector<8x256xf32>
    %c0_24 = arith.constant 0 : index
    %c0_25 = arith.constant 0 : index
    %c0_26 = arith.constant 0 : index
    %61 = vector.load %arg5[%c0_24, %c0_25, %c0_26] : memref<2x16x32xbf16, #tpu.memory_space<vmem>>, vector<1x16x32xbf16>
    %62 = vector.shape_cast %61 : vector<1x16x32xbf16> to vector<16x32xbf16>
    %c0_27 = arith.constant 0 : index
    %c0_28 = arith.constant 0 : index
    %c0_29 = arith.constant 0 : index
    %63 = vector.load %arg6[%c0_27, %c0_28, %c0_29] : memref<2x16x1xf32, #tpu.memory_space<vmem>>, vector<1x16x1xf32>
    %64 = vector.shape_cast %63 : vector<1x16x1xf32> to vector<16x1xf32>
    %cst_30 = arith.constant 0.000000e+00 : f32
    %65 = vector.broadcast %cst_30 : f32 to vector<8x128xf32>
    %66 = tpu.concatenate %65, %60 in 1 : vector<8x128xf32>, vector<8x256xf32> -> vector<8x384xf32>
    %67 = vector.extract_strided_slice %66 {offsets = [0, 111], sizes = [8, 256], strides = [1, 1]} : vector<8x384xf32> to vector<8x256xf32>
    %cst_31 = arith.constant 0.000000e+00 : f32
    %68 = vector.shape_cast %22 : vector<1x256xi1> to vector<1x256xi1>
    %69 = vector.broadcast %68 : vector<1x256xi1> to vector<8x256xi1>
    %70 = vector.broadcast %cst_31 : f32 to vector<8x256xf32>
    %71 = arith.select %69, %67, %70 : vector<8x256xi1>, vector<8x256xf32>
    %72 = vector.extract_strided_slice %66 {offsets = [0, 112], sizes = [8, 256], strides = [1, 1]} : vector<8x384xf32> to vector<8x256xf32>
    %73 = vector.extract_strided_slice %66 {offsets = [0, 127], sizes = [8, 256], strides = [1, 1]} : vector<8x384xf32> to vector<8x256xf32>
    %cst_32 = arith.constant 0.000000e+00 : f32
    %74 = vector.shape_cast %22 : vector<1x256xi1> to vector<1x256xi1>
    %75 = vector.broadcast %74 : vector<1x256xi1> to vector<8x256xi1>
    %76 = vector.broadcast %cst_32 : f32 to vector<8x256xf32>
    %77 = arith.select %75, %73, %76 : vector<8x256xi1>, vector<8x256xf32>
    %78 = tpu.concatenate %71, %72, %77, %60 in 0 : vector<8x256xf32>, vector<8x256xf32>, vector<8x256xf32>, vector<8x256xf32> -> vector<32x256xf32>
    %79 = arith.truncf %78 : vector<32x256xf32> to vector<32x256xbf16>
    %cst_33 = arith.constant dense<0.000000e+00> : vector<16x256xf32>
    %80 = tpu.matmul %62, %79, %cst_33 {dimension_numbers = #tpu.dot_dimension_numbers<[1], [0], [0], [1], [0, 0, 1, 1], [], []>} : vector<16x32xbf16>, vector<32x256xbf16>, vector<16x256xf32> -> vector<16x256xf32>
    %81 = vector.broadcast %64 : vector<16x1xf32> to vector<16x256xf32>
    %82 = arith.addf %80, %81 : vector<16x256xf32>
    %83 = vector.extract_strided_slice %82 {offsets = [0, 0], sizes = [8, 256], strides = [1, 1]} : vector<16x256xf32> to vector<8x256xf32>
    %84 = vector.extract_strided_slice %82 {offsets = [8, 0], sizes = [8, 256], strides = [1, 1]} : vector<16x256xf32> to vector<8x256xf32>
    %85 = arith.negf %84 : vector<8x256xf32>
    %86 = math.exp %85 : vector<8x256xf32>
    %cst_34 = arith.constant 1.000000e+00 : f32
    %87 = vector.broadcast %cst_34 : f32 to vector<8x256xf32>
    %88 = arith.addf %87, %86 : vector<8x256xf32>
    %89 = arith.divf %87, %88 : vector<8x256xf32>
    %90 = arith.mulf %83, %89 : vector<8x256xf32>
    %91 = arith.addf %1, %90 : vector<8x256xf32>
    %cst_35 = arith.constant 0.000000e+00 : f32
    %92 = vector.broadcast %cst_35 : f32 to vector<8x256xf32>
    %93 = arith.cmpf ogt, %91, %92 : vector<8x256xf32>
    %cst_36 = arith.constant 0.000000e+00 : f32
    %94 = vector.broadcast %cst_36 : f32 to vector<8x256xf32>
    %95 = arith.minimumf %91, %94 : vector<8x256xf32>
    %96 = math.exp %95 : vector<8x256xf32>
    %cst_37 = arith.constant 1.000000e+00 : f32
    %97 = vector.broadcast %cst_37 : f32 to vector<8x256xf32>
    %98 = arith.subf %96, %97 : vector<8x256xf32>
    %99 = arith.select %93, %91, %98 : vector<8x256xi1>, vector<8x256xf32>
    %c1 = arith.constant 1 : index
    %c0_38 = arith.constant 0 : index
    %c0_39 = arith.constant 0 : index
    %100 = vector.load %arg3[%c1, %c0_38, %c0_39] : memref<2x8x32xbf16, #tpu.memory_space<vmem>>, vector<1x8x32xbf16>
    %101 = vector.shape_cast %100 : vector<1x8x32xbf16> to vector<8x32xbf16>
    %c1_40 = arith.constant 1 : index
    %c0_41 = arith.constant 0 : index
    %c0_42 = arith.constant 0 : index
    %102 = vector.load %arg4[%c1_40, %c0_41, %c0_42] : memref<2x8x1xf32, #tpu.memory_space<vmem>>, vector<1x8x1xf32>
    %103 = vector.shape_cast %102 : vector<1x8x1xf32> to vector<8x1xf32>
    %cst_43 = arith.constant 0.000000e+00 : f32
    %104 = vector.broadcast %cst_43 : f32 to vector<8x128xf32>
    %105 = tpu.concatenate %104, %99 in 1 : vector<8x128xf32>, vector<8x256xf32> -> vector<8x384xf32>
    %106 = vector.extract_strided_slice %105 {offsets = [0, 111], sizes = [8, 256], strides = [1, 1]} : vector<8x384xf32> to vector<8x256xf32>
    %cst_44 = arith.constant 0.000000e+00 : f32
    %107 = vector.shape_cast %22 : vector<1x256xi1> to vector<1x256xi1>
    %108 = vector.broadcast %107 : vector<1x256xi1> to vector<8x256xi1>
    %109 = vector.broadcast %cst_44 : f32 to vector<8x256xf32>
    %110 = arith.select %108, %106, %109 : vector<8x256xi1>, vector<8x256xf32>
    %111 = vector.extract_strided_slice %105 {offsets = [0, 112], sizes = [8, 256], strides = [1, 1]} : vector<8x384xf32> to vector<8x256xf32>
    %112 = vector.extract_strided_slice %105 {offsets = [0, 127], sizes = [8, 256], strides = [1, 1]} : vector<8x384xf32> to vector<8x256xf32>
    %cst_45 = arith.constant 0.000000e+00 : f32
    %113 = vector.shape_cast %22 : vector<1x256xi1> to vector<1x256xi1>
    %114 = vector.broadcast %113 : vector<1x256xi1> to vector<8x256xi1>
    %115 = vector.broadcast %cst_45 : f32 to vector<8x256xf32>
    %116 = arith.select %114, %112, %115 : vector<8x256xi1>, vector<8x256xf32>
    %117 = tpu.concatenate %110, %111, %116, %99 in 0 : vector<8x256xf32>, vector<8x256xf32>, vector<8x256xf32>, vector<8x256xf32> -> vector<32x256xf32>
    %118 = arith.truncf %117 : vector<32x256xf32> to vector<32x256xbf16>
    %cst_46 = arith.constant dense<0.000000e+00> : vector<8x256xf32>
    %119 = tpu.matmul %101, %118, %cst_46 {dimension_numbers = #tpu.dot_dimension_numbers<[1], [0], [0], [1], [0, 0, 1, 1], [], []>} : vector<8x32xbf16>, vector<32x256xbf16>, vector<8x256xf32> -> vector<8x256xf32>
    %120 = vector.broadcast %103 : vector<8x1xf32> to vector<8x256xf32>
    %121 = arith.addf %119, %120 : vector<8x256xf32>
    %cst_47 = arith.constant 0.000000e+00 : f32
    %122 = vector.broadcast %cst_47 : f32 to vector<8x256xf32>
    %123 = arith.cmpf ogt, %121, %122 : vector<8x256xf32>
    %cst_48 = arith.constant 0.000000e+00 : f32
    %124 = vector.broadcast %cst_48 : f32 to vector<8x256xf32>
    %125 = arith.minimumf %121, %124 : vector<8x256xf32>
    %126 = math.exp %125 : vector<8x256xf32>
    %cst_49 = arith.constant 1.000000e+00 : f32
    %127 = vector.broadcast %cst_49 : f32 to vector<8x256xf32>
    %128 = arith.subf %126, %127 : vector<8x256xf32>
    %129 = arith.select %123, %121, %128 : vector<8x256xi1>, vector<8x256xf32>
    %c1_50 = arith.constant 1 : index
    %c0_51 = arith.constant 0 : index
    %c0_52 = arith.constant 0 : index
    %130 = vector.load %arg5[%c1_50, %c0_51, %c0_52] : memref<2x16x32xbf16, #tpu.memory_space<vmem>>, vector<1x16x32xbf16>
    %131 = vector.shape_cast %130 : vector<1x16x32xbf16> to vector<16x32xbf16>
    %c1_53 = arith.constant 1 : index
    %c0_54 = arith.constant 0 : index
    %c0_55 = arith.constant 0 : index
    %132 = vector.load %arg6[%c1_53, %c0_54, %c0_55] : memref<2x16x1xf32, #tpu.memory_space<vmem>>, vector<1x16x1xf32>
    %133 = vector.shape_cast %132 : vector<1x16x1xf32> to vector<16x1xf32>
    %cst_56 = arith.constant 0.000000e+00 : f32
    %134 = vector.broadcast %cst_56 : f32 to vector<8x128xf32>
    %135 = tpu.concatenate %134, %129 in 1 : vector<8x128xf32>, vector<8x256xf32> -> vector<8x384xf32>
    %136 = vector.extract_strided_slice %135 {offsets = [0, 111], sizes = [8, 256], strides = [1, 1]} : vector<8x384xf32> to vector<8x256xf32>
    %cst_57 = arith.constant 0.000000e+00 : f32
    %137 = vector.shape_cast %22 : vector<1x256xi1> to vector<1x256xi1>
    %138 = vector.broadcast %137 : vector<1x256xi1> to vector<8x256xi1>
    %139 = vector.broadcast %cst_57 : f32 to vector<8x256xf32>
    %140 = arith.select %138, %136, %139 : vector<8x256xi1>, vector<8x256xf32>
    %141 = vector.extract_strided_slice %135 {offsets = [0, 112], sizes = [8, 256], strides = [1, 1]} : vector<8x384xf32> to vector<8x256xf32>
    %142 = vector.extract_strided_slice %135 {offsets = [0, 127], sizes = [8, 256], strides = [1, 1]} : vector<8x384xf32> to vector<8x256xf32>
    %cst_58 = arith.constant 0.000000e+00 : f32
    %143 = vector.shape_cast %22 : vector<1x256xi1> to vector<1x256xi1>
    %144 = vector.broadcast %143 : vector<1x256xi1> to vector<8x256xi1>
    %145 = vector.broadcast %cst_58 : f32 to vector<8x256xf32>
    %146 = arith.select %144, %142, %145 : vector<8x256xi1>, vector<8x256xf32>
    %147 = tpu.concatenate %140, %141, %146, %129 in 0 : vector<8x256xf32>, vector<8x256xf32>, vector<8x256xf32>, vector<8x256xf32> -> vector<32x256xf32>
    %148 = arith.truncf %147 : vector<32x256xf32> to vector<32x256xbf16>
    %cst_59 = arith.constant dense<0.000000e+00> : vector<16x256xf32>
    %149 = tpu.matmul %131, %148, %cst_59 {dimension_numbers = #tpu.dot_dimension_numbers<[1], [0], [0], [1], [0, 0, 1, 1], [], []>} : vector<16x32xbf16>, vector<32x256xbf16>, vector<16x256xf32> -> vector<16x256xf32>
    %150 = vector.broadcast %133 : vector<16x1xf32> to vector<16x256xf32>
    %151 = arith.addf %149, %150 : vector<16x256xf32>
    %152 = vector.extract_strided_slice %151 {offsets = [0, 0], sizes = [8, 256], strides = [1, 1]} : vector<16x256xf32> to vector<8x256xf32>
    %153 = vector.extract_strided_slice %151 {offsets = [8, 0], sizes = [8, 256], strides = [1, 1]} : vector<16x256xf32> to vector<8x256xf32>
    %154 = arith.negf %153 : vector<8x256xf32>
    %155 = math.exp %154 : vector<8x256xf32>
    %cst_60 = arith.constant 1.000000e+00 : f32
    %156 = vector.broadcast %cst_60 : f32 to vector<8x256xf32>
    %157 = arith.addf %156, %155 : vector<8x256xf32>
    %158 = arith.divf %156, %157 : vector<8x256xf32>
    %159 = arith.mulf %152, %158 : vector<8x256xf32>
    %160 = arith.addf %91, %159 : vector<8x256xf32>
    %c0_61 = arith.constant 0 : index
    %c0_62 = arith.constant 0 : index
    %161 = vector.load %arg7[%c0_61, %c0_62] : memref<16x8xbf16, #tpu.memory_space<vmem>>, vector<16x8xbf16>
    %162 = arith.truncf %160 : vector<8x256xf32> to vector<8x256xbf16>
    %cst_63 = arith.constant dense<0.000000e+00> : vector<16x256xf32>
    %163 = tpu.matmul %161, %162, %cst_63 {dimension_numbers = #tpu.dot_dimension_numbers<[1], [0], [0], [1], [0, 0, 1, 1], [], []>} : vector<16x8xbf16>, vector<8x256xbf16>, vector<16x256xf32> -> vector<16x256xf32>
    %c0_64 = arith.constant 0 : index
    %c0_65 = arith.constant 0 : index
    %164 = vector.load %arg8[%c0_64, %c0_65] : memref<16x1xf32, #tpu.memory_space<vmem>>, vector<16x1xf32>
    %165 = vector.broadcast %164 : vector<16x1xf32> to vector<16x256xf32>
    %166 = arith.addf %163, %165 : vector<16x256xf32>
    %cst_66 = arith.constant 2.500000e-01 : f32
    %167 = vector.broadcast %cst_66 : f32 to vector<16x256xf32>
    %168 = arith.mulf %166, %167 : vector<16x256xf32>
    %c0_67 = arith.constant 0 : index
    %c0_68 = arith.constant 0 : index
    %169 = vector.load %arg9[%c0_67, %c0_68] : memref<32x8xbf16, #tpu.memory_space<vmem>>, vector<32x8xbf16>
    %170 = arith.truncf %160 : vector<8x256xf32> to vector<8x256xbf16>
    %cst_69 = arith.constant dense<0.000000e+00> : vector<32x256xf32>
    %171 = tpu.matmul %169, %170, %cst_69 {dimension_numbers = #tpu.dot_dimension_numbers<[1], [0], [0], [1], [0, 0, 1, 1], [], []>} : vector<32x8xbf16>, vector<8x256xbf16>, vector<32x256xf32> -> vector<32x256xf32>
    %c0_70 = arith.constant 0 : index
    %c0_71 = arith.constant 0 : index
    %172 = vector.load %arg10[%c0_70, %c0_71] : memref<32x1xbf16, #tpu.memory_space<vmem>>, vector<32x1xbf16>
    %173 = arith.extf %172 : vector<32x1xbf16> to vector<32x1xf32>
    %174 = vector.broadcast %173 : vector<32x1xf32> to vector<32x256xf32>
    %175 = vector.broadcast %3 : vector<1x256xf32> to vector<32x256xf32>
    %176 = arith.mulf %174, %175 : vector<32x256xf32>
    %177 = arith.addf %171, %176 : vector<32x256xf32>
    %c0_72 = arith.constant 0 : index
    %c0_73 = arith.constant 0 : index
    %178 = vector.load %arg11[%c0_72, %c0_73] : memref<32x1xf32, #tpu.memory_space<vmem>>, vector<32x1xf32>
    %179 = vector.broadcast %178 : vector<32x1xf32> to vector<32x256xf32>
    %180 = arith.addf %177, %179 : vector<32x256xf32>
    %181 = vector.extract_strided_slice %180 {offsets = [0, 0], sizes = [16, 256], strides = [1, 1]} : vector<32x256xf32> to vector<16x256xf32>
    %182 = vector.extract_strided_slice %180 {offsets = [16, 0], sizes = [16, 256], strides = [1, 1]} : vector<32x256xf32> to vector<16x256xf32>
    %183 = arith.truncf %168 : vector<16x256xf32> to vector<16x256xbf16>
    %184 = arith.truncf %181 : vector<16x256xf32> to vector<16x256xbf16>
    %cst_74 = arith.constant dense<0.000000e+00> : vector<256x256xf32>
    %185 = tpu.matmul %183, %184, %cst_74 {dimension_numbers = #tpu.dot_dimension_numbers<[0], [0], [1], [1], [0, 1, 1, 1], [], []>} : vector<16x256xbf16>, vector<16x256xbf16>, vector<256x256xf32> -> vector<256x256xf32>
    %186 = tpu.iota {dimensions = array<i32: 0>} : vector<256x256xi32>
    %187 = tpu.iota {dimensions = array<i32: 1>} : vector<256x256xi32>
    %188 = arith.cmpi slt, %187, %186 : vector<256x256xi32>
    %cst_75 = arith.constant dense<0xFF800000> : vector<256xf32>
    %189 = vector.multi_reduction <maximumf>, %185, %cst_75 [1] : vector<256x256xf32> to vector<256xf32>
    %190 = vector.shape_cast %189 : vector<256xf32> to vector<256x1xf32>
    %191 = vector.broadcast %190 : vector<256x1xf32> to vector<256x256xf32>
    %192 = arith.subf %185, %191 : vector<256x256xf32>
    %193 = math.exp %192 : vector<256x256xf32>
    %cst_76 = arith.constant 0.000000e+00 : f32
    %194 = vector.broadcast %cst_76 : f32 to vector<256x256xf32>
    %195 = arith.select %188, %193, %194 : vector<256x256xi1>, vector<256x256xf32>
    %cst_77 = arith.constant dense<0.000000e+00> : vector<256xf32>
    %196 = vector.multi_reduction <add>, %195, %cst_77 [1] : vector<256x256xf32> to vector<256xf32>
    %197 = vector.shape_cast %196 : vector<256xf32> to vector<256x1xf32>
    %cst_78 = arith.constant 9.99999997E-7 : f32
    %198 = vector.broadcast %cst_78 : f32 to vector<256x1xf32>
    %199 = arith.addf %197, %198 : vector<256x1xf32>
    %200 = tpu.reciprocal %199 {approx = true} : vector<256x1xf32> -> vector<256x1xf32>
    %201 = vector.broadcast %200 : vector<256x1xf32> to vector<256x256xf32>
    %202 = arith.mulf %195, %201 : vector<256x256xf32>
    %203 = arith.truncf %182 : vector<16x256xf32> to vector<16x256xbf16>
    %204 = arith.truncf %202 : vector<256x256xf32> to vector<256x256xbf16>
    %cst_79 = arith.constant dense<0.000000e+00> : vector<16x256xf32>
    %205 = tpu.matmul %203, %204, %cst_79 {dimension_numbers = #tpu.dot_dimension_numbers<[1], [1], [0], [0], [0, 0, 1, 0], [], []>} : vector<16x256xbf16>, vector<256x256xbf16>, vector<16x256xf32> -> vector<16x256xf32>
    %c0_80 = arith.constant 0 : index
    %c0_81 = arith.constant 0 : index
    %206 = vector.load %arg12[%c0_80, %c0_81] : memref<8x8xbf16, #tpu.memory_space<vmem>>, vector<8x8xbf16>
    %cst_82 = arith.constant 0.000000e+00 : f32
    %207 = vector.broadcast %cst_82 : f32 to vector<8x256xf32>
    %208 = arith.cmpf ogt, %160, %207 : vector<8x256xf32>
    %cst_83 = arith.constant 0.000000e+00 : f32
    %209 = vector.broadcast %cst_83 : f32 to vector<8x256xf32>
    %210 = arith.minimumf %160, %209 : vector<8x256xf32>
    %211 = math.exp %210 : vector<8x256xf32>
    %cst_84 = arith.constant 1.000000e+00 : f32
    %212 = vector.broadcast %cst_84 : f32 to vector<8x256xf32>
    %213 = arith.subf %211, %212 : vector<8x256xf32>
    %214 = arith.select %208, %160, %213 : vector<8x256xi1>, vector<8x256xf32>
    %215 = arith.truncf %214 : vector<8x256xf32> to vector<8x256xbf16>
    %cst_85 = arith.constant dense<0.000000e+00> : vector<8x256xf32>
    %216 = tpu.matmul %206, %215, %cst_85 {dimension_numbers = #tpu.dot_dimension_numbers<[1], [0], [0], [1], [0, 0, 1, 1], [], []>} : vector<8x8xbf16>, vector<8x256xbf16>, vector<8x256xf32> -> vector<8x256xf32>
    %c0_86 = arith.constant 0 : index
    %c0_87 = arith.constant 0 : index
    %217 = vector.load %arg13[%c0_86, %c0_87] : memref<8x1xf32, #tpu.memory_space<vmem>>, vector<8x1xf32>
    %218 = vector.broadcast %217 : vector<8x1xf32> to vector<8x256xf32>
    %219 = arith.addf %216, %218 : vector<8x256xf32>
    %cst_88 = arith.constant 0.000000e+00 : f32
    %220 = vector.broadcast %cst_88 : f32 to vector<8x256xf32>
    %221 = arith.cmpf ogt, %219, %220 : vector<8x256xf32>
    %cst_89 = arith.constant 0.000000e+00 : f32
    %222 = vector.broadcast %cst_89 : f32 to vector<8x256xf32>
    %223 = arith.minimumf %219, %222 : vector<8x256xf32>
    %224 = math.exp %223 : vector<8x256xf32>
    %cst_90 = arith.constant 1.000000e+00 : f32
    %225 = vector.broadcast %cst_90 : f32 to vector<8x256xf32>
    %226 = arith.subf %224, %225 : vector<8x256xf32>
    %227 = arith.select %221, %219, %226 : vector<8x256xi1>, vector<8x256xf32>
    %c0_91 = arith.constant 0 : index
    %c0_92 = arith.constant 0 : index
    %228 = vector.load %arg14[%c0_91, %c0_92] : memref<8x16xbf16, #tpu.memory_space<vmem>>, vector<8x16xbf16>
    %cst_93 = arith.constant 0.000000e+00 : f32
    %229 = vector.broadcast %cst_93 : f32 to vector<16x256xf32>
    %230 = arith.cmpf ogt, %205, %229 : vector<16x256xf32>
    %cst_94 = arith.constant 0.000000e+00 : f32
    %231 = vector.broadcast %cst_94 : f32 to vector<16x256xf32>
    %232 = arith.minimumf %205, %231 : vector<16x256xf32>
    %233 = math.exp %232 : vector<16x256xf32>
    %cst_95 = arith.constant 1.000000e+00 : f32
    %234 = vector.broadcast %cst_95 : f32 to vector<16x256xf32>
    %235 = arith.subf %233, %234 : vector<16x256xf32>
    %236 = arith.select %230, %205, %235 : vector<16x256xi1>, vector<16x256xf32>
    %237 = arith.truncf %236 : vector<16x256xf32> to vector<16x256xbf16>
    %cst_96 = arith.constant dense<0.000000e+00> : vector<8x256xf32>
    %238 = tpu.matmul %228, %237, %cst_96 {dimension_numbers = #tpu.dot_dimension_numbers<[1], [0], [0], [1], [0, 0, 1, 1], [], []>} : vector<8x16xbf16>, vector<16x256xbf16>, vector<8x256xf32> -> vector<8x256xf32>
    %c0_97 = arith.constant 0 : index
    %c0_98 = arith.constant 0 : index
    %239 = vector.load %arg15[%c0_97, %c0_98] : memref<8x1xf32, #tpu.memory_space<vmem>>, vector<8x1xf32>
    %240 = vector.broadcast %239 : vector<8x1xf32> to vector<8x256xf32>
    %241 = arith.addf %238, %240 : vector<8x256xf32>
    %cst_99 = arith.constant 0.000000e+00 : f32
    %242 = vector.broadcast %cst_99 : f32 to vector<8x256xf32>
    %243 = arith.cmpf ogt, %241, %242 : vector<8x256xf32>
    %cst_100 = arith.constant 0.000000e+00 : f32
    %244 = vector.broadcast %cst_100 : f32 to vector<8x256xf32>
    %245 = arith.minimumf %241, %244 : vector<8x256xf32>
    %246 = math.exp %245 : vector<8x256xf32>
    %cst_101 = arith.constant 1.000000e+00 : f32
    %247 = vector.broadcast %cst_101 : f32 to vector<8x256xf32>
    %248 = arith.subf %246, %247 : vector<8x256xf32>
    %249 = arith.select %243, %241, %248 : vector<8x256xi1>, vector<8x256xf32>
    %c0_102 = arith.constant 0 : index
    %c0_103 = arith.constant 0 : index
    %250 = vector.load %arg16[%c0_102, %c0_103] : memref<8x8xbf16, #tpu.memory_space<vmem>>, vector<8x8xbf16>
    %251 = arith.addf %227, %249 : vector<8x256xf32>
    %cst_104 = arith.constant 0.000000e+00 : f32
    %252 = vector.broadcast %cst_104 : f32 to vector<8x256xf32>
    %253 = arith.cmpf ogt, %251, %252 : vector<8x256xf32>
    %cst_105 = arith.constant 0.000000e+00 : f32
    %254 = vector.broadcast %cst_105 : f32 to vector<8x256xf32>
    %255 = arith.minimumf %251, %254 : vector<8x256xf32>
    %256 = math.exp %255 : vector<8x256xf32>
    %cst_106 = arith.constant 1.000000e+00 : f32
    %257 = vector.broadcast %cst_106 : f32 to vector<8x256xf32>
    %258 = arith.subf %256, %257 : vector<8x256xf32>
    %259 = arith.select %253, %251, %258 : vector<8x256xi1>, vector<8x256xf32>
    %260 = arith.truncf %259 : vector<8x256xf32> to vector<8x256xbf16>
    %cst_107 = arith.constant dense<0.000000e+00> : vector<8x256xf32>
    %261 = tpu.matmul %250, %260, %cst_107 {dimension_numbers = #tpu.dot_dimension_numbers<[1], [0], [0], [1], [0, 0, 1, 1], [], []>} : vector<8x8xbf16>, vector<8x256xbf16>, vector<8x256xf32> -> vector<8x256xf32>
    %c0_108 = arith.constant 0 : index
    %c0_109 = arith.constant 0 : index
    %262 = vector.load %arg17[%c0_108, %c0_109] : memref<8x1xf32, #tpu.memory_space<vmem>>, vector<8x1xf32>
    %263 = vector.broadcast %262 : vector<8x1xf32> to vector<8x256xf32>
    %264 = arith.addf %261, %263 : vector<8x256xf32>
    %cst_110 = arith.constant 0.000000e+00 : f32
    %265 = vector.broadcast %cst_110 : f32 to vector<8x256xf32>
    %266 = arith.cmpf ogt, %264, %265 : vector<8x256xf32>
    %cst_111 = arith.constant 0.000000e+00 : f32
    %267 = vector.broadcast %cst_111 : f32 to vector<8x256xf32>
    %268 = arith.minimumf %264, %267 : vector<8x256xf32>
    %269 = math.exp %268 : vector<8x256xf32>
    %cst_112 = arith.constant 1.000000e+00 : f32
    %270 = vector.broadcast %cst_112 : f32 to vector<8x256xf32>
    %271 = arith.subf %269, %270 : vector<8x256xf32>
    %272 = arith.select %266, %264, %271 : vector<8x256xi1>, vector<8x256xf32>
    %c0_113 = arith.constant 0 : index
    %c0_114 = arith.constant 0 : index
    %c0_115 = arith.constant 0 : index
    %273 = vector.load %arg18[%c0_113, %c0_114, %c0_115] : memref<1x8x256xf32, #tpu.memory_space<vmem>>, vector<1x8x256xf32>
    %274 = vector.shape_cast %273 : vector<1x8x256xf32> to vector<8x256xf32>
    %275 = vector.shape_cast %272 : vector<8x256xf32> to vector<1x8x256xf32>
    tpu.vector_store %arg18[%c0_113, %c0_114, %c0_115], %275 {strides = array<i32>} : memref<1x8x256xf32, #tpu.memory_space<vmem>>, vector<1x8x256xf32>,
    return
  }
  func.func @transform_0(%arg0: i32) -> (i32, i32, i32) {
    %c0_i32 = arith.constant 0 : i32
    %c0_i32_0 = arith.constant 0 : i32
    %c0_i32_1 = arith.constant 0 : i32
    return %arg0, %c0_i32, %c0_i32_0 : i32, i32, i32
  }
  func.func @transform_1(%arg0: i32) -> (i32, i32, i32) {
    %c0_i32 = arith.constant 0 : i32
    %c0_i32_0 = arith.constant 0 : i32
    %c0_i32_1 = arith.constant 0 : i32
    return %arg0, %c0_i32, %c0_i32_0 : i32, i32, i32
  }
  func.func @transform_2(%arg0: i32) -> (i32, i32, i32) {
    %c0_i32 = arith.constant 0 : i32
    %c0_i32_0 = arith.constant 0 : i32
    %c0_i32_1 = arith.constant 0 : i32
    %c0_i32_2 = arith.constant 0 : i32
    return %c0_i32, %c0_i32_0, %c0_i32_1 : i32, i32, i32
  }
  func.func @transform_3(%arg0: i32) -> (i32, i32, i32) {
    %c0_i32 = arith.constant 0 : i32
    %c0_i32_0 = arith.constant 0 : i32
    %c0_i32_1 = arith.constant 0 : i32
    %c0_i32_2 = arith.constant 0 : i32
    return %c0_i32, %c0_i32_0, %c0_i32_1 : i32, i32, i32
  }
  func.func @transform_4(%arg0: i32) -> (i32, i32, i32) {
    %c0_i32 = arith.constant 0 : i32
    %c0_i32_0 = arith.constant 0 : i32
    %c0_i32_1 = arith.constant 0 : i32
    %c0_i32_2 = arith.constant 0 : i32
    return %c0_i32, %c0_i32_0, %c0_i32_1 : i32, i32, i32
  }
  func.func @transform_5(%arg0: i32) -> (i32, i32, i32) {
    %c0_i32 = arith.constant 0 : i32
    %c0_i32_0 = arith.constant 0 : i32
    %c0_i32_1 = arith.constant 0 : i32
    %c0_i32_2 = arith.constant 0 : i32
    return %c0_i32, %c0_i32_0, %c0_i32_1 : i32, i32, i32
  }
  func.func @transform_6(%arg0: i32) -> (i32, i32) {
    %c0_i32 = arith.constant 0 : i32
    %c0_i32_0 = arith.constant 0 : i32
    %c0_i32_1 = arith.constant 0 : i32
    return %c0_i32, %c0_i32_0 : i32, i32
  }
  func.func @transform_7(%arg0: i32) -> (i32, i32) {
    %c0_i32 = arith.constant 0 : i32
    %c0_i32_0 = arith.constant 0 : i32
    %c0_i32_1 = arith.constant 0 : i32
    return %c0_i32, %c0_i32_0 : i32, i32
  }
  func.func @transform_8(%arg0: i32) -> (i32, i32) {
    %c0_i32 = arith.constant 0 : i32
    %c0_i32_0 = arith.constant 0 : i32
    %c0_i32_1 = arith.constant 0 : i32
    return %c0_i32, %c0_i32_0 : i32, i32
  }
  func.func @transform_9(%arg0: i32) -> (i32, i32) {
    %c0_i32 = arith.constant 0 : i32
    %c0_i32_0 = arith.constant 0 : i32
    %c0_i32_1 = arith.constant 0 : i32
    return %c0_i32, %c0_i32_0 : i32, i32
  }
  func.func @transform_10(%arg0: i32) -> (i32, i32) {
    %c0_i32 = arith.constant 0 : i32
    %c0_i32_0 = arith.constant 0 : i32
    %c0_i32_1 = arith.constant 0 : i32
    return %c0_i32, %c0_i32_0 : i32, i32
  }
  func.func @transform_11(%arg0: i32) -> (i32, i32) {
    %c0_i32 = arith.constant 0 : i32
    %c0_i32_0 = arith.constant 0 : i32
    %c0_i32_1 = arith.constant 0 : i32
    return %c0_i32, %c0_i32_0 : i32, i32
  }
  func.func @transform_12(%arg0: i32) -> (i32, i32) {
    %c0_i32 = arith.constant 0 : i32
    %c0_i32_0 = arith.constant 0 : i32
    %c0_i32_1 = arith.constant 0 : i32
    return %c0_i32, %c0_i32_0 : i32, i32
  }
  func.func @transform_13(%arg0: i32) -> (i32, i32) {
    %c0_i32 = arith.constant 0 : i32
    %c0_i32_0 = arith.constant 0 : i32
    %c0_i32_1 = arith.constant 0 : i32
    return %c0_i32, %c0_i32_0 : i32, i32
  }
  func.func @transform_14(%arg0: i32) -> (i32, i32) {
    %c0_i32 = arith.constant 0 : i32
    %c0_i32_0 = arith.constant 0 : i32
    %c0_i32_1 = arith.constant 0 : i32
    return %c0_i32, %c0_i32_0 : i32, i32
  }
  func.func @transform_15(%arg0: i32) -> (i32, i32) {
    %c0_i32 = arith.constant 0 : i32
    %c0_i32_0 = arith.constant 0 : i32
    %c0_i32_1 = arith.constant 0 : i32
    return %c0_i32, %c0_i32_0 : i32, i32
  }
  func.func @transform_16(%arg0: i32) -> (i32, i32) {
    %c0_i32 = arith.constant 0 : i32
    %c0_i32_0 = arith.constant 0 : i32
    %c0_i32_1 = arith.constant 0 : i32
    return %c0_i32, %c0_i32_0 : i32, i32
  }
  func.func @transform_17(%arg0: i32) -> (i32, i32, i32) {
    %c0_i32 = arith.constant 0 : i32
    %c0_i32_0 = arith.constant 0 : i32
    %c0_i32_1 = arith.constant 0 : i32
    return %arg0, %c0_i32, %c0_i32_0 : i32, i32, i32
  }
}

</mosaic_0001>

<bundles_post_ra>
// kernel: pixelsnail_block.1
= control target key start
LH: loop header
LB: loop body
LE: loop exit
PB: predicated region body
PF: predicated region fallthrough
CT: control target
= control target key end

     0   :  { %s3203_s24 = smov 0   ;;  %s4022_s0 = inlined_call_operand.vmem [shape: f32[2,8,256], index: 0, kind: input, shape index: {}]   ;;  %s4023_s1 = inlined_call_operand.vmem [shape: f32[2,1,256], index: 1, kind: input, shape index: {}]   ;;  %s4024_s2 = inlined_call_operand.vmem [shape: bf16[2,8,32], index: 2, kind: input, shape index: {}]   ;;  %s4025_s3 = inlined_call_operand.vmem [shape: f32[2,8,1], index: 3, kind: input, shape index: {}]   ;;  %s4026_s4 = inlined_call_operand.vmem [shape: bf16[2,16,32], index: 4, kind: input, shape index: {}]   ;;  %s4027_s5 = inlined_call_operand.vmem [shape: f32[2,16,1], index: 5, kind: input, shape index: {}]   ;;  %s4028_s6 = inlined_call_operand.vmem [shape: bf16[16,8], index: 6, kind: input, shape index: {}]   ;;  %s4029_s7 = inlined_call_operand.vmem [shape: f32[16,1], index: 7, kind: input, shape index: {}]   ;;  %s4030_s8 = inlined_call_operand.vmem [shape: bf16[32,8], index: 8, kind: input, shape index: {}]   ;;  %s4031_s9 = inlined_call_operand.vmem [shape: bf16[32,1], index: 9, kind: input, shape index: {}]   ;;  %s4032_s10 = inlined_call_operand.vmem [shape: f32[32,1], index: 10, kind: input, shape index: {}]   ;;  %s4033_s11 = inlined_call_operand.vmem [shape: bf16[8,8], index: 11, kind: input, shape index: {}]   ;;  %s4034_s12 = inlined_call_operand.vmem [shape: f32[8,1], index: 12, kind: input, shape index: {}]   ;;  %s4035_s13 = inlined_call_operand.vmem [shape: bf16[8,16], index: 13, kind: input, shape index: {}]   ;;  %s4036_s14 = inlined_call_operand.vmem [shape: f32[8,1], index: 14, kind: input, shape index: {}]   ;;  %s4037_s15 = inlined_call_operand.vmem [shape: bf16[8,8], index: 15, kind: input, shape index: {}]   ;;  %s4038_s16 = inlined_call_operand.vmem [shape: f32[8,1], index: 16, kind: input, shape index: {}]   ;;  %s4039_s17 = inlined_call_operand.vmem [shape: f32[2,8,256], index: 17, kind: output, shape index: {}]  }
   0x1   :  { %4048 = sst [smem:[#allocation7_spill]] %s4022_s0 }
   0x2   :  { %4049 = sst [smem:[#allocation8_spill]] %s4023_s1 }
   0x3 LB: > { %s2650_s25 = sadd.s32 4294967295, %s3105_s24   ;;  %p2654_p0 = scmp.ge.s32.totalorder %s3105_s24, 1  ;;  %s3105_s24 = sphi %s3203_s24, %s27_s24  }
   0x4   : > { %p496_p1 = scmp.lt.s32.totalorder %s3105_s24, 3 }
   0x6   : > { %p497_p2 = pnand %p2654_p0, %p496_p1 }
   0x8   : > { %500 = sbr.rel (%p497_p2) target bundleno = 3378 (0xd32), region = 88 }
   0xf   : > { %p552_p3 = scmp.lt.s32.totalorder %s2650_s25, 1  ;;  %v3107_v0 = vmov 0.0   ;;  %s3108_s26 = smov 17   ;;  %v4046_v14 = vmov 0   ;;  %v612_v15 = vld [vmem:[%s4025_s3] sm:$0xff]  ;;  %v570_v16 = vlaneseq  ;;  %vm626_vm3 = vcmask 138240  }
  0x10   : > { %620 = vrot.lane.b32.xlu1 %v3107_v0, %s3108_s26  ;;  %s4050_s0 = sld [smem:[#allocation7_spill]]  ;;  %s3109_s18 = smov 16   ;;  %702 = vmatprep.mubr.bf16.mxu0 %v4046_v14  ;;  %vm652_vm4 = vcmask 130048   ;;  %vm3112_vm6 = vmmov 1   ;;  %vm639_vm8 = vcmask 7168   ;;  %vm666_vm10 = vcmask 261120  }
  0x11   : > { %s4073_s25 = smov (!%p552_p3, %s2650_s25), 1  ;;  %s3110_s19 = smov 1   ;;  %2817 = vset.pattern.permute.xlu0 %v4046_v14  ;;  %811 = vmatprep.mubr.bf16.mxu1 %v4046_v14  ;;  %v3243_v17 = vand.u32 127, %v570_v16  ;;  %v611_v45 = vld [vmem:[%s4024_s2] sm:$0xf] }
  0x12   : > { %s2777_s27 = sshll.u32 %s4073_s25, 4  ;;  %2833 = vset.pattern.permute.xlu1 %v4046_v14  ;;  %s4055_s23 = sld [smem:[#allocation8_spill]] }
  0x13   : > { %v3248_v19 = vadd.s32 128, %v3243_v17  ;;  %v577_v22 = vand.u32 15, %v3243_v17 }
  0x14   : > { %646 = vrot.lane.b32.xlu1 %v3107_v0, %s3109_s18 }
  0x15   : > { %v584_v21 = vand.u32 15, %v3248_v19  ;;  %vm597_vm5 = vcmp.ge.s32.totalorder %v577_v22, 1 }
  0x16   : > { %s556_s30 = scalar_lea.vmem %s4050_s0, %s2777_s27  ;;  %vm3266_vm9 = vmpackc.low %vm3112_vm6, %vm597_vm5 }
  0x17   : > { %v3221_v1 = vld [vmem:[%s556_s30] sm:$0xff]  ;;  %v3223_v2 = vld [vmem:[%s556_s30 + $0x8] sm:$0xff]  ;;  %vm598_vm2 = vcmp.ge.s32.totalorder %v584_v21, 1 }
  0x18   : > { %v601_v3 = vmin.f32 %v3221_v1, 0.0  ;;  %v602_v4 = vmin.f32 %v3223_v2, 0.0  ;;  %633 = vrot.lane.b32.xlu1 %v3107_v0, %s3110_s19  ;;  %vm599_vm0 = vcmp.gt.f32.partialorder %v3221_v1, 0.0  ;;  %vm600_vm1 = vcmp.gt.f32.partialorder %v3223_v2, 0.0  ;;  %vm3256_vm7 = vmpackc.low %vm3112_vm6, %vm598_vm2  ;;  %v725_v0 = vld [vmem:[%s4027_s5] sm:$0xff] }
  0x19   : > { %vm1087_vm2 = vcmask 64512  }
  0x1a   : > { %v603_v5 = vmul.f32 1.442695, %v601_v3  ;;  %v605_v6 = vmul.f32 1.442695, %v602_v4  ;;  %v726_v3 = vld [vmem:[%s4027_s5 + $0x8] sm:$0xff] }
  0x1c   : > { %2879 = vpow2.f32 %v603_v5 }
  0x1d   : > { %2881 = vpow2.f32 %v605_v6 }
  0x26   : > { %v2880_v7 = vpop.eup %2879 }
  0x27   : > { %v2882_v8 = vpop.eup %2881  ;;  %v2660_v9 = vadd.f32 -1.0, %v2880_v7 }
  0x28   : > { %v2661_v10 = vadd.f32 -1.0, %v2882_v8 }
  0x29   : > { %v609_v11 = vsel %vm599_vm0, %v3221_v1, %v2660_v9 }
  0x2a   : > { %v610_v12 = vsel %vm600_vm1, %v3223_v2, %v2661_v10  ;;  %vm1091_vm1 = vcmask 1043456  }
  0x2b   : > { %v2802_v13 = vpack.i.bf16 %v610_v12, %v609_v11 }
  0x2d   : > { %2803 = vrot.lane.b32.xlu0 %v2802_v13, %s3108_s26 }
  0x31   : > { %2808 = vrot.lane.b32.xlu0 %v2802_v13, %s3109_s18 }
  0x35   : > { %2813 = vrot.lane.b32.xlu0 %v2802_v13, %s3110_s19 }
  0x39   : > { %663 = vperm.xlu0 %2817, %v612_v15  }
  0x82   : > { %v3245_v18 = vpop.permute.xlu1 %620 }
  0x86   : > { %v3252_v23 = vpop.permute.xlu1 %646 }
  0x8a   : > { %v3264_v35 = vpop.permute.xlu1 %633 }
  0x9f   : > { %v2804_v20 = vpop.permute.xlu0 %2803 }
  0xa0   : > { %v2806_v24 = vunpack.i.h.bf16 %v2804_v20  ;;  %v2805_v25 = vunpack.i.l.bf16 %v2804_v20 }
  0xa2   : > { %v628_v29 = vsel %vm626_vm3, %v2805_v25, %v2806_v24  ;;  %v627_v32 = vsel %vm626_vm3, %v3245_v18, %v2805_v25 }
  0xa3   : > { %v2809_v26 = vpop.permute.xlu0 %2808 }
  0xa4   : > { %v2811_v27 = vunpack.i.h.bf16 %v2809_v26  ;;  %v2810_v28 = vunpack.i.l.bf16 %v2809_v26 }
  0xa6   : > { %v654_v30 = vsel %vm652_vm4, %v2810_v28, %v2811_v27  ;;  %v653_v33 = vsel %vm652_vm4, %v3252_v23, %v2810_v28 }
  0xa7   : > { %v2814_v34 = vpop.permute.xlu0 %2813  ;;  %v2663_v36 = vpack.c.bf16 %v654_v30, %v628_v29  ;;  %v2666_v38 = vpack.c.bf16 %v653_v33, %v627_v32  ;;  %v2874_v29 = vld [vmem:[%s4026_s4] sm:$0xff]  }
  0xa8   : > { %v2816_v39 = vunpack.i.h.bf16 %v2814_v34  ;;  %v2815_v40 = vunpack.i.l.bf16 %v2814_v34 }
  0xa9   : > { %2664 = vmatprep.subr.msk.bf16.mxu0 %vm3256_vm7, %v2663_v36 }
  0xaa   : > { %v641_v41 = vsel %vm639_vm8, %v2815_v40, %v2816_v39  ;;  %2667 = vmatpush1.bf16.msk.msra.mxu0 %vm3266_vm9, %v2666_v38  ;;  %v640_v42 = vsel %vm639_vm8, %v3264_v35, %v2815_v40 }
  0xab   : > { %v2669_v43 = vpack.c.bf16 %v610_v12, %v641_v41  ;;  %v2672_v44 = vpack.c.bf16 %v609_v11, %v640_v42 }
  0xad   : > { %2670 = vmatprep.subr.msk.bf16.mxu0 %vm3256_vm7, %v2669_v43 }
  0xae   : > { %2673 = vmatpush1.bf16.msk.msra.mxu0 %vm3266_vm9, %v2672_v44 }
  0xb1   : > { %2674 = vmatmul.mubr.msk.bf16.vlgmr.msra.gmra.mrb[0].mxu0 %vm666_vm10, %v611_v45 }
  0xb2   : > { %928 = vmatprep.mubr.bf16.mxu0 %v4046_v14 }
  0xb8   : > { %v664_v46 = vpop.permute.xlu0 %663 }
 0x184   : > { %v704_v47 = vpop.f32.mrb[0].mxu0 }
 0x185   : > { %v705_v48 = vadd.f32 %v704_v47, %v664_v46  ;;  %v706_v49 = vpop.f32.mrb[1].mxu0 }
 0x186   : > { %v707_v50 = vadd.f32 %v706_v49, %v664_v46  ;;  %v708_v51 = vpop.f32.mrb[2].mxu0 }
 0x187   : > { %v713_v52 = vmin.f32 %v705_v48, 0.0  ;;  %v709_v53 = vpop.f32.mrb[3].mxu0  ;;  %vm711_vm11 = vcmp.gt.f32.partialorder %v705_v48, 0.0 }
 0x188   : > { %v714_v54 = vmin.f32 %v707_v50, 0.0  ;;  %vm712_vm12 = vcmp.gt.f32.partialorder %v707_v50, 0.0 }
 0x189   : > { %v715_v55 = vmul.f32 1.442695, %v713_v52 }
 0x18a   : > { %v717_v56 = vmul.f32 1.442695, %v714_v54 }
 0x18b   : > { %2883 = vpow2.f32 %v715_v55 }
 0x18c   : > { %2885 = vpow2.f32 %v717_v56 }
 0x195   : > { %v2884_v57 = vpop.eup %2883 }
 0x196   : > { %v2886_v58 = vpop.eup %2885  ;;  %v2675_v59 = vadd.f32 -1.0, %v2884_v57 }
 0x197   : > { %v2676_v60 = vadd.f32 -1.0, %v2886_v58 }
 0x198   : > { %v721_v61 = vsel %vm711_vm11, %v705_v48, %v2675_v59 }
 0x199   : > { %v722_v62 = vsel %vm712_vm12, %v707_v50, %v2676_v60 }
 0x19a   : > { %v2828_v63 = vpack.i.bf16 %v722_v62, %v721_v61 }
 0x19c   : > { %2829 = vrot.lane.b32.xlu0 %v2828_v63, %s3110_s19  ;;  %2819 = vrot.lane.b32.xlu1 %v2828_v63, %s3108_s26 }
 0x1a0   : > { %763 = vperm.xlu0 %2817, %v725_v0   ;;  %2824 = vrot.lane.b32.xlu1 %v2828_v63, %s3109_s18  ;;  %v2696_v0 = vld [vmem:[%s4025_s3 + $0x8] sm:$0xff] }
 0x1a4   : > { %768 = vperm.xlu1 %2833, %v726_v3  }
 0x20e   : > { %v2830_v4 = vpop.permute.xlu0 %2829  ;;  %v2820_v5 = vpop.permute.xlu1 %2819 }
 0x20f   : > { %v2832_v6 = vunpack.i.h.bf16 %v2830_v4  ;;  %v2831_v7 = vunpack.i.l.bf16 %v2830_v4  ;;  %v2822_v8 = vunpack.i.h.bf16 %v2820_v5  ;;  %v2821_v9 = vunpack.i.l.bf16 %v2820_v5 }
 0x211   : > { %v744_v13 = vsel %vm639_vm8, %v2831_v7, %v2832_v6  ;;  %v734_v15 = vsel %vm626_vm3, %v2821_v9, %v2822_v8  ;;  %v733_v21 = vsel %vm626_vm3, %v3245_v18, %v2821_v9  ;;  %v743_v26 = vsel %vm639_vm8, %v3264_v35, %v2831_v7 }
 0x212   : > { %v2825_v10 = vpop.permute.xlu1 %2824  ;;  %v2685_v27 = vpack.c.bf16 %v722_v62, %v744_v13  ;;  %v2688_v28 = vpack.c.bf16 %v721_v61, %v743_v26 }
 0x213   : > { %v2827_v11 = vunpack.i.h.bf16 %v2825_v10  ;;  %v2826_v12 = vunpack.i.l.bf16 %v2825_v10 }
 0x215   : > { %v754_v20 = vsel %vm652_vm4, %v2826_v12, %v2827_v11  ;;  %v753_v22 = vsel %vm652_vm4, %v3252_v23, %v2826_v12 }
 0x216   : > { %v2679_v24 = vpack.c.bf16 %v754_v20, %v734_v15  ;;  %v2682_v25 = vpack.c.bf16 %v753_v22, %v733_v21 }
 0x218   : > { %2680 = vmatprep.subr.msk.bf16.mxu1 %vm3256_vm7, %v2679_v24 }
 0x219   : > { %2683 = vmatpush1.bf16.msk.msra.mxu1 %vm3266_vm9, %v2682_v25 }
 0x21a   : > { %2686 = vmatprep.subr.msk.bf16.mxu1 %vm3256_vm7, %v2685_v27 }
 0x21d   : > { %2689 = vmatpush1.bf16.msk.msra.mxu1 %vm3266_vm9, %v2688_v28  ;;  %v2695_v28 = vld [vmem:[%s4024_s2 + $0x4] sm:$0xf] }
 0x21f   : > { %v764_v46 = vpop.permute.xlu0 %763 }
 0x220   : > { %2690 = vmatmul.mubr.msk.bf16.vlgmr.msra.gmra.mrb[0].mxu1 %vm666_vm10, %v2874_v29 }
 0x221   : > { %1039 = vmatprep.mubr.bf16.mxu1 %v4046_v14 }
 0x223   : > { %v769_v32 = vpop.permute.xlu1 %768 }
 0x2f3   : > { %v813_v30 = vpop.f32.mrb[0].mxu1 }
 0x2f4   : > { %v815_v33 = vpop.f32.mrb[1].mxu1  ;;  %v814_v47 = vadd.f32 %v813_v30, %v764_v46 }
 0x2f5   : > { %v817_v34 = vpop.f32.mrb[2].mxu1  ;;  %v816_v49 = vadd.f32 %v815_v33, %v764_v46 }
 0x2f6   : > { %v818_v36 = vadd.f32 %v817_v34, %v769_v32  ;;  %v819_v38 = vpop.f32.mrb[3].mxu1 }
 0x2f7   : > { %v820_v39 = vadd.f32 %v819_v38, %v769_v32 }
 0x2f8   : > { %v2691_v40 = vmul.f32 -1.442695, %v818_v36 }
 0x2f9   : > { %v2692_v41 = vmul.f32 -1.442695, %v820_v39 }
 0x2fa   : > { %2887 = vpow2.f32 %v2691_v40 }
 0x2fb   : > { %2889 = vpow2.f32 %v2692_v41 }
 0x304   : > { %v2888_v42 = vpop.eup %2887 }
 0x305   : > { %v2890_v43 = vpop.eup %2889  ;;  %v828_v44 = vadd.f32 1.0, %v2888_v42 }
 0x306   : > { %v829_v45 = vadd.f32 1.0, %v2890_v43 }
 0x307   : > { %2891 = vrcp.f32 %v828_v44 }
 0x308   : > { %2893 = vrcp.f32 %v829_v45 }
 0x311   : > { %v2892_v48 = vpop.eup %2891 }
 0x312   : > { %v2894_v50 = vpop.eup %2893  ;;  %v834_v51 = vmul.f32 %v2892_v48, %v814_v47 }
 0x313   : > { %v835_v52 = vmul.f32 %v2894_v50, %v816_v49  ;;  %v2715_v50 = vld [vmem:[%s4027_s5 + $0x18] sm:$0xff] }
 0x314   : > { %v3318_v53 = vadd.f32 %v834_v51, %v3221_v1  ;;  %v2780_v51 = vld [vmem:[%s4031_s9] sm:$0xff]  }
 0x315   : > { %v3321_v54 = vadd.f32 %v835_v52, %v3223_v2  ;;  %v2781_v52 = vunpack.c.l.bf16 %v2780_v51 }
 0x316   : > { %v840_v55 = vmin.f32 %v3318_v53, 0.0  ;;  %vm838_vm13 = vcmp.gt.f32.partialorder %v3318_v53, 0.0 }
 0x317   : > { %v841_v56 = vmin.f32 %v3321_v54, 0.0  ;;  %vm839_vm14 = vcmp.gt.f32.partialorder %v3321_v54, 0.0 }
 0x318   : > { %v842_v57 = vmul.f32 1.442695, %v840_v55  ;;  %v2782_v55 = vunpack.c.h.bf16 %v2780_v51 }
 0x319   : > { %v844_v58 = vmul.f32 1.442695, %v841_v56  ;;  %v1070_v56 = vld [vmem:[%s4029_s7] sm:$0xff] }
 0x31a   : > { %2895 = vpow2.f32 %v842_v57  ;;  %v2714_v57 = vld [vmem:[%s4027_s5 + $0x10] sm:$0xff] }
 0x31b   : > { %2897 = vpow2.f32 %v844_v58  ;;  %v2864_v58 = vpack.i.bf16 %v2782_v55, %v2781_v52 }
 0x324   : > { %v2896_v59 = vpop.eup %2895 }
 0x325   : > { %v2898_v60 = vpop.eup %2897  ;;  %v2693_v61 = vadd.f32 -1.0, %v2896_v59  ;;  %v1071_v59 = vld [vmem:[%s4029_s7 + $0x8] sm:$0xff] }
 0x326   : > { %v2694_v62 = vadd.f32 -1.0, %v2898_v60  ;;  %v1266_v60 = vld [vmem:[%s4032_s10 + $0x8] sm:$0xff] }
 0x327   : > { %v848_v1 = vsel %vm838_vm13, %v3318_v53, %v2693_v61  ;;  %v1265_v61 = vld [vmem:[%s4032_s10] sm:$0xff] }
 0x328   : > { %v849_v2 = vsel %vm839_vm14, %v3321_v54, %v2694_v62 }
 0x329   : > { %v2839_v63 = vpack.i.bf16 %v849_v2, %v848_v1 }
 0x32b   : > { %2840 = vrot.lane.b32.xlu0 %v2839_v63, %s3109_s18  ;;  %2835 = vrot.lane.b32.xlu1 %v2839_v63, %s3108_s26 }
 0x32f   : > { %890 = vperm.xlu0 %2817, %v2696_v0   ;;  %2845 = vrot.lane.b32.xlu1 %v2839_v63, %s3110_s19 }
 0x39d   : > { %v2841_v3 = vpop.permute.xlu0 %2840  ;;  %v2836_v4 = vpop.permute.xlu1 %2835 }
 0x39e   : > { %v2843_v5 = vunpack.i.h.bf16 %v2841_v3  ;;  %v2842_v6 = vunpack.i.l.bf16 %v2841_v3  ;;  %v2838_v7 = vunpack.i.h.bf16 %v2836_v4  ;;  %v2837_v8 = vunpack.i.l.bf16 %v2836_v4 }
 0x3a0   : > { %v880_v9 = vsel %vm652_vm4, %v3252_v23, %v2842_v6  ;;  %v881_v10 = vsel %vm652_vm4, %v2842_v6, %v2843_v5  ;;  %v860_v11 = vsel %vm626_vm3, %v3245_v18, %v2837_v8  ;;  %v861_v12 = vsel %vm626_vm3, %v2837_v8, %v2838_v7 }
 0x3a1   : > { %v2701_v13 = vpack.c.bf16 %v880_v9, %v860_v11  ;;  %v2846_v15 = vpop.permute.xlu1 %2845  ;;  %v2698_v20 = vpack.c.bf16 %v881_v10, %v861_v12 }
 0x3a2   : > { %v2848_v21 = vunpack.i.h.bf16 %v2846_v15  ;;  %v2847_v22 = vunpack.i.l.bf16 %v2846_v15 }
 0x3a3   : > { %2699 = vmatprep.subr.msk.bf16.mxu0 %vm3256_vm7, %v2698_v20  ;;  %v2875_v20 = vld [vmem:[%s4026_s4 + $0x8] sm:$0xff]  }
 0x3a4   : > { %v870_v24 = vsel %vm639_vm8, %v3264_v35, %v2847_v22  ;;  %v871_v25 = vsel %vm639_vm8, %v2847_v22, %v2848_v21  ;;  %2702 = vmatpush1.bf16.msk.msra.mxu0 %vm3266_vm9, %v2701_v13 }
 0x3a5   : > { %v2704_v26 = vpack.c.bf16 %v849_v2, %v871_v25  ;;  %v2707_v27 = vpack.c.bf16 %v848_v1, %v870_v24 }
 0x3a7   : > { %2705 = vmatprep.subr.msk.bf16.mxu0 %vm3256_vm7, %v2704_v26 }
 0x3a8   : > { %2708 = vmatpush1.bf16.msk.msra.mxu0 %vm3266_vm9, %v2707_v27 }
 0x3ab   : > { %2709 = vmatmul.mubr.msk.bf16.vlgmr.msra.gmra.mrb[4].mxu0 %vm666_vm10, %v2695_v28 }
 0x3ac   : > { %1130 = vmatprep.mubr.bf16.mxu0 %v4046_v14 }
 0x3ae   : > { %v891_v29 = vpop.permute.xlu0 %890 }
 0x47e   : > { %v930_v30 = vpop.f32.mrb[4].mxu0 }
 0x47f   : > { %v931_v32 = vadd.f32 %v930_v30, %v891_v29  ;;  %v932_v33 = vpop.f32.mrb[5].mxu0 }
 0x480   : > { %v933_v34 = vadd.f32 %v932_v33, %v891_v29  ;;  %v934_v36 = vpop.f32.mrb[6].mxu0 }
 0x481   : > { %v939_v38 = vmin.f32 %v931_v32, 0.0  ;;  %v935_v39 = vpop.f32.mrb[7].mxu0  ;;  %vm937_vm15 = vcmp.gt.f32.partialorder %v931_v32, 0.0 }
 0x482   : > { %v940_v40 = vmin.f32 %v933_v34, 0.0  ;;  %vm938_vm0 = vcmp.gt.f32.partialorder %v933_v34, 0.0 }
 0x483   : > { %v941_v41 = vmul.f32 1.442695, %v939_v38 }
 0x484   : > { %v943_v42 = vmul.f32 1.442695, %v940_v40 }
 0x485   : > { %2899 = vpow2.f32 %v941_v41 }
 0x486   : > { %2901 = vpow2.f32 %v943_v42 }
 0x48f   : > { %v2900_v43 = vpop.eup %2899 }
 0x490   : > { %v2902_v44 = vpop.eup %2901  ;;  %v2710_v45 = vadd.f32 -1.0, %v2900_v43 }
 0x491   : > { %v2711_v46 = vadd.f32 -1.0, %v2902_v44 }
 0x492   : > { %v947_v47 = vsel %vm937_vm15, %v931_v32, %v2710_v45 }
 0x493   : > { %v948_v48 = vsel %vm938_vm0, %v933_v34, %v2711_v46 }
 0x494   : > { %v2854_v49 = vpack.i.bf16 %v948_v48, %v947_v47 }
 0x496   : > { %2855 = vrot.lane.b32.xlu0 %v2854_v49, %s3109_s18  ;;  %2850 = vrot.lane.b32.xlu1 %v2854_v49, %s3108_s26  ;;  %s2657_s26 = sshll.u32 %s4073_s25, 1 }
 0x497   : > { %s560_s28 = scalar_lea.vmem %s4055_s23, %s2657_s26  ;;  %s565_s23 = scalar_lea.vmem %s4039_s17, %s2777_s27 }
 0x498   : > { %v569_v55 = vld [vmem:[%s560_s28] sm:$0x3] }
 0x49a   : > { %996 = vperm.xlu0 %2817, %v2715_v50   ;;  %2860 = vrot.lane.b32.xlu1 %v2854_v49, %s3110_s19  ;;  %v3429_v50 = vshrl.u32 %v570_v16, 7 }
 0x49c   : > { %v1180_v51 = vsub.s32 0, %v3429_v50  ;;  %vm1607_vm6 = vcmp.lt.s32.totalorder %v3243_v17, %v3429_v50 }
 0x49e   : > { %1074 = vperm.xlu0 %2817, %v1070_v56   ;;  %991 = vperm.xlu1 %2833, %v2714_v57   ;;  %v1184_v56 = vsub.s32 1, %v3429_v50 }
 0x4a2   : > { %2865 = vperm.xlu0 %2817, %v2864_v58   ;;  %1079 = vperm.xlu1 %2833, %v1071_v59   ;;  %v3436_v58 = vrot.slane %v569_v55, %v1180_v51  ;;  %v3438_v59 = vrot.slane %v569_v55, %v1184_v56 }
 0x4a4   : > { %4056 = vst [vmem:[#allocation2_spill] sm:$0xff] %v3436_v58  ;;  %4057 = vst [vmem:[#allocation3_spill] sm:$0xff] %v3438_v59 }
 0x4a6   : > { %1276 = vperm.xlu0 %2817, %v1266_v60   ;;  %1271 = vperm.xlu1 %2833, %v1265_v61  }
 0x508   : > { %v2856_v62 = vpop.permute.xlu0 %2855  ;;  %v2851_v1 = vpop.permute.xlu1 %2850 }
 0x509   : > { %v2858_v2 = vunpack.i.h.bf16 %v2856_v62  ;;  %v2857_v63 = vunpack.i.l.bf16 %v2856_v62  ;;  %v2853_v0 = vunpack.i.h.bf16 %v2851_v1  ;;  %v2852_v3 = vunpack.i.l.bf16 %v2851_v1 }
 0x50b   : > { %v981_v4 = vsel %vm652_vm4, %v3252_v23, %v2857_v63  ;;  %v982_v5 = vsel %vm652_vm4, %v2857_v63, %v2858_v2  ;;  %v961_v6 = vsel %vm626_vm3, %v3245_v18, %v2852_v3  ;;  %v962_v7 = vsel %vm626_vm3, %v2852_v3, %v2853_v0 }
 0x50c   : > { %v2718_v8 = vpack.c.bf16 %v982_v5, %v962_v7  ;;  %v2721_v9 = vpack.c.bf16 %v981_v4, %v961_v6  ;;  %v2861_v10 = vpop.permute.xlu1 %2860 }
 0x50d   : > { %v2863_v11 = vunpack.i.h.bf16 %v2861_v10  ;;  %v2862_v12 = vunpack.i.l.bf16 %v2861_v10 }
 0x50e   : > { %2719 = vmatprep.subr.msk.bf16.mxu1 %vm3256_vm7, %v2718_v8 }
 0x50f   : > { %v971_v13 = vsel %vm639_vm8, %v3264_v35, %v2862_v12  ;;  %v972_v23 = vsel %vm639_vm8, %v2862_v12, %v2863_v11  ;;  %2722 = vmatpush1.bf16.msk.msra.mxu1 %vm3266_vm9, %v2721_v9 }
 0x510   : > { %v2724_v15 = vpack.c.bf16 %v948_v48, %v972_v23  ;;  %v2727_v18 = vpack.c.bf16 %v947_v47, %v971_v13 }
 0x512   : > { %2725 = vmatprep.subr.msk.bf16.mxu1 %vm3256_vm7, %v2724_v15 }
 0x513   : > { %2728 = vmatpush1.bf16.msk.msra.mxu1 %vm3266_vm9, %v2727_v18 }
 0x516   : > { %2729 = vmatmul.mubr.msk.bf16.vlgmr.msra.gmra.mrb[4].mxu1 %vm666_vm10, %v2875_v20 }
 0x517   : > { %1244 = vmatprep.mubr.bf16.mxu1 %v4046_v14 }
 0x519   : > { %v997_v22 = vpop.permute.xlu0 %996 }
 0x51d   : > { %v992_v33 = vpop.permute.xlu1 %991  ;;  %v1075_v48 = vpop.permute.xlu0 %1074 }
 0x521   : > { %v2866_v52 = vpop.permute.xlu0 %2865  ;;  %v1080_v61 = vpop.permute.xlu1 %1079 }
 0x522   : > { %v2867_v57 = vunpack.i.l.bf16 %v2866_v52  ;;  %v2868_v60 = vunpack.i.h.bf16 %v2866_v52 }
 0x524   : > { %v1188_v16 = vmul.f32 %v2867_v57, %v3436_v58  ;;  %v1189_v63 = vmul.f32 %v2867_v57, %v3438_v59  ;;  %v1190_v6 = vmul.f32 %v2868_v60, %v3436_v58  ;;  %v1191_v11 = vmul.f32 %v2868_v60, %v3438_v59 }
 0x525   : > { %v1277_v20 = vpop.permute.xlu0 %1276 }
 0x5e9   : > { %v1041_v35 = vpop.f32.mrb[4].mxu1 }
 0x5ea   : > { %v1043_v21 = vpop.f32.mrb[5].mxu1  ;;  %v1042_v34 = vadd.f32 %v1041_v35, %v992_v33  ;;  %v1272_v35 = vpop.permute.xlu1 %1271 }
 0x5eb   : > { %v1045_v24 = vpop.f32.mrb[6].mxu1  ;;  %v1044_v38 = vadd.f32 %v1043_v21, %v992_v33 }
 0x5ec   : > { %v1046_v25 = vadd.f32 %v1045_v24, %v997_v22  ;;  %v1047_v26 = vpop.f32.mrb[7].mxu1 }
 0x5ed   : > { %v1048_v27 = vadd.f32 %v1047_v26, %v997_v22 }
 0x5ee   : > { %v2730_v31 = vmul.f32 -1.442695, %v1046_v25 }
 0x5ef   : > { %v2731_v28 = vmul.f32 -1.442695, %v1048_v27 }
 0x5f0   : > { %2903 = vpow2.f32 %v2730_v31 }
 0x5f1   : > { %2905 = vpow2.f32 %v2731_v28 }
 0x5fa   : > { %v2904_v29 = vpop.eup %2903 }
 0x5fb   : > { %v2906_v30 = vpop.eup %2905  ;;  %v1056_v32 = vadd.f32 1.0, %v2904_v29 }
 0x5fc   : > { %v1057_v37 = vadd.f32 1.0, %v2906_v30 }
 0x5fd   : > { %2907 = vrcp.f32 %v1056_v32 }
 0x5fe   : > { %2909 = vrcp.f32 %v1057_v37 }
 0x607   : > { %v2908_v36 = vpop.eup %2907 }
 0x608   : > { %v2910_v39 = vpop.eup %2909  ;;  %v1062_v40 = vmul.f32 %v2908_v36, %v1042_v34 }
 0x609   : > { %v1063_v41 = vmul.f32 %v2910_v39, %v1044_v38 }
 0x60a   : > { %v3404_v42 = vadd.f32 %v1062_v40, %v3318_v53  ;;  %v2876_v53 = vld [vmem:[%s4028_s6] sm:$0xff]  }
 0x60b   : > { %v3407_v43 = vadd.f32 %v1063_v41, %v3321_v54  ;;  %v2877_v54 = vld [vmem:[%s4030_s8] sm:$0xff]  }
 0x60c   : > { %v1068_v44 = vpack.c.bf16 %v3404_v42, %v3404_v42  ;;  %v2327_v39 = vmin.f32 %v3404_v42, 0.0  ;;  %vm2325_vm5 = vcmp.gt.f32.partialorder %v3404_v42, 0.0 }
 0x60d   : > { %v1069_v45 = vpack.c.bf16 %v3407_v43, %v3407_v43  ;;  %v2328_v47 = vmin.f32 %v3407_v43, 0.0  ;;  %vm2326_vm3 = vcmp.gt.f32.partialorder %v3407_v43, 0.0 }
 0x60e   : > { %v1093_v46 = vsel %vm1091_vm1, %v1068_v44, 0  ;;  %v2329_v40 = vmul.f32 1.442695, %v2327_v39 }
 0x60f   : > { %2733 = vmatprep.subr.msk.bf16.mxu0 %vm1091_vm1, %v1069_v45  ;;  %2737 = vmatprep.subr.msk.bf16.mxu1 %vm1091_vm1, %v1069_v45  ;;  %v2331_v49 = vmul.f32 1.442695, %v2328_v47 }
 0x610   : > { %1099 = vmatpush1.bf16.msra.mxu0 %v1093_v46  ;;  %1213 = vmatpush1.bf16.msra.mxu1 %v1093_v46 }
 0x611   : > { %2911 = vpow2.f32 %v2331_v49 }
 0x612   : > { %2913 = vpow2.f32 %v2329_v40 }
 0x613   : > { %2734 = vmatmul.mubr.msk.bf16.vlgmr.msra.gmra.mrb[8].mxu0 %vm1087_vm2, %v2876_v53  ;;  %2738 = vmatmul.mubr.msk.bf16.vlgmr.msra.gmra.mrb[8].mxu1 %vm1087_vm2, %v2877_v54 }
 0x614   : > { %1413 = vmatprep.mubr.bf16.mxu0 %v4046_v14  ;;  %1254 = vmatprep.mubr.bf16.mxu1 %v4046_v14 }
 0x61b   : > { %v2912_v62 = vpop.eup %2911 }
 0x61c   : > { %v2757_v18 = vadd.f32 -1.0, %v2912_v62  ;;  %v2914_v41 = vpop.eup %2913 }
 0x61d   : > { %v2756_v44 = vadd.f32 -1.0, %v2914_v41 }
 0x61e   : > { %v2336_v33 = vsel %vm2326_vm3, %v3407_v43, %v2757_v18 }
 0x61f   : > { %v2338_v38 = vpack.c.bf16 %v2336_v33, %v2336_v33  ;;  %v2335_v45 = vsel %vm2325_vm5, %v3404_v42, %v2756_v44 }
 0x620   : > { %v2337_v43 = vpack.c.bf16 %v2335_v45, %v2335_v45 }
 0x622   : > { %v2349_v53 = vsel %vm1091_vm1, %v2337_v43, 0 }
 0x6e6   : > { %v1132_v1 = vpop.f32.mrb[8].mxu0  ;;  %v1246_v2 = vpop.f32.mrb[8].mxu1 }
 0x6e7   : > { %v1133_v0 = vadd.f32 %v1132_v1, %v1075_v48  ;;  %v1247_v3 = vadd.f32 %v1246_v2, %v1188_v16  ;;  %v1134_v4 = vpop.f32.mrb[9].mxu0  ;;  %v1248_v5 = vpop.f32.mrb[9].mxu1 }
 0x6e8   : > { %v1135_v7 = vadd.f32 %v1134_v4, %v1075_v48  ;;  %v1249_v8 = vadd.f32 %v1248_v5, %v1189_v63  ;;  %v1136_v9 = vpop.f32.mrb[10].mxu0  ;;  %v1250_v10 = vpop.f32.mrb[10].mxu1 }
 0x6e9   : > { %v1137_v12 = vadd.f32 %v1136_v9, %v1080_v61  ;;  %v1251_v13 = vadd.f32 %v1250_v10, %v1190_v6  ;;  %v1138_v23 = vpop.f32.mrb[11].mxu0  ;;  %v1252_v15 = vpop.f32.mrb[11].mxu1  ;;  %v1141_v24 = vmul.f32 0.25, %v1133_v0  ;;  %v1289_v25 = vadd.f32 %v1272_v35, %v1247_v3 }
 0x6ea   : > { %v1139_v21 = vadd.f32 %v1138_v23, %v1080_v61  ;;  %v1253_v22 = vadd.f32 %v1252_v15, %v1191_v11  ;;  %v1142_v31 = vmul.f32 0.25, %v1135_v7  ;;  %v1290_v28 = vadd.f32 %v1272_v35, %v1249_v8 }
 0x6eb   : > { %v1143_v26 = vmul.f32 0.25, %v1137_v12  ;;  %v1291_v27 = vadd.f32 %v1277_v20, %v1251_v13 }
 0x6ec   : > { %v1144_v29 = vmul.f32 0.25, %v1139_v21  ;;  %v1292_v30 = vadd.f32 %v1277_v20, %v1253_v22 }
 0x6ed   : > { %v1297_v32 = vpack.c.bf16 %v1143_v26, %v1141_v24  ;;  %v1299_v37 = vpack.c.bf16 %v1291_v27, %v1289_v25 }
 0x6ee   : > { %v1298_v34 = vpack.c.bf16 %v1144_v29, %v1142_v31  ;;  %v1300_v36 = vpack.c.bf16 %v1292_v30, %v1290_v28 }
 0x6ef   : > { %1301 = vxpose.xlu1.c.b16.start.end [1/1] (short) %v1297_v32, 128 }
 0x6f0   : > { %1381 = vmatprep.subr.bf16.mxu0 %v1300_v36  ;;  %1317 = vxpose.xlu0.c.b16.start.end [1/1] (short) %v1298_v34, 128 }
 0x6f1   : > { %1382 = vmatpush1.bf16.msra.mxu0 %v1299_v37 }
 0x6f2   : > { %2758 = vmatprep.subr.msk.bf16.mxu0 %vm1091_vm1, %v2338_v38 }
 0x755   : > { %v1309_v46 = vpop.trf.xlu1 }
 0x756   : > { %2740 = vmatmul.mubr.msk.bf16.vlgmr.msra.gmra.mrb[12].mxu0 %vm652_vm4, %v1309_v46  ;;  %v1325_v55 = vpop.trf.xlu0 }
 0x757   : > { %2355 = vmatpush1.bf16.msra.mxu0 %v2349_v53  ;;  %1423 = vmatprep.mubr.bf16.mxu0 %v4046_v14 }
 0x759   : > { %v1310_v54 = vpop.trf.xlu1 }
 0x75a   : > { %v1326_v56 = vpop.trf.xlu0 }
 0x75d   : > { %v1311_v47 = vpop.trf.xlu1 }
 0x75e   : > { %2741 = vmatmul.mubr.msk.bf16.gmra.mrb[16].mxu0 %vm652_vm4, %v1310_v54  ;;  %v1327_v57 = vpop.trf.xlu0 }
 0x75f   : > { %1433 = vmatprep.mubr.bf16.mxu0 %v4046_v14 }
 0x761   : > { %v1312_v42 = vpop.trf.xlu1 }
 0x762   : > { %v1328_v60 = vpop.trf.xlu0 }
 0x765   : > { %v1313_v48 = vpop.trf.xlu1 }
 0x766   : > { %2742 = vmatmul.mubr.msk.bf16.gmra.mrb[20].mxu0 %vm652_vm4, %v1311_v47  ;;  %v1329_v61 = vpop.trf.xlu0 }
 0x767   : > { %1443 = vmatprep.mubr.bf16.mxu0 %v4046_v14 }
 0x769   : > { %v1314_v49 = vpop.trf.xlu1 }
 0x76a   : > { %v1330_v16 = vpop.trf.xlu0 }
 0x76d   : > { %v1315_v51 = vpop.trf.xlu1 }
 0x76e   : > { %2743 = vmatmul.mubr.msk.bf16.gmra.mrb[24].mxu0 %vm652_vm4, %v1312_v42  ;;  %v1331_v62 = vpop.trf.xlu0 }
 0x76f   : > { %1453 = vmatprep.mubr.bf16.mxu0 %v4046_v14 }
 0x771   : > { %v1316_v52 = vpop.trf.xlu1 }
 0x772   : > { %v1332_v1 = vpop.trf.xlu0 }
 0x776   : > { %2744 = vmatmul.mubr.msk.bf16.gmra.mrb[28].mxu0 %vm652_vm4, %v1313_v48 }
 0x777   : > { %1463 = vmatprep.mubr.bf16.mxu0 %v4046_v14 }
 0x77e   : > { %2745 = vmatmul.mubr.msk.bf16.gmra.mrb[32].mxu0 %vm652_vm4, %v1314_v49 }
 0x77f   : > { %1473 = vmatprep.mubr.bf16.mxu0 %v4046_v14 }
 0x786   : > { %2746 = vmatmul.mubr.msk.bf16.gmra.mrb[36].mxu0 %vm652_vm4, %v1315_v51 }
 0x787   : > { %1483 = vmatprep.mubr.bf16.mxu0 %v4046_v14 }
 0x78e   : > { %2747 = vmatmul.mubr.msk.bf16.gmra.mrb[40].mxu0 %vm652_vm4, %v1316_v52 }
 0x78f   : > { %1493 = vmatprep.mubr.bf16.mxu0 %v4046_v14 }
 0x796   : > { %2748 = vmatmul.mubr.msk.bf16.gmra.mrb[44].mxu0 %vm652_vm4, %v1325_v55 }
 0x797   : > { %1503 = vmatprep.mubr.bf16.mxu0 %v4046_v14 }
 0x79e   : > { %2749 = vmatmul.mubr.msk.bf16.gmra.mrb[48].mxu0 %vm652_vm4, %v1326_v56 }
 0x79f   : > { %1513 = vmatprep.mubr.bf16.mxu0 %v4046_v14 }
 0x7a6   : > { %2750 = vmatmul.mubr.msk.bf16.gmra.mrb[52].mxu0 %vm652_vm4, %v1327_v57 }
 0x7a7   : > { %1523 = vmatprep.mubr.bf16.mxu0 %v4046_v14 }
 0x7ae   : > { %2751 = vmatmul.mubr.msk.bf16.gmra.mrb[56].mxu0 %vm652_vm4, %v1328_v60 }
 0x7af   : > { %1533 = vmatprep.mubr.bf16.mxu0 %v4046_v14 }
 0x7b6   : > { %2752 = vmatmul.mubr.msk.bf16.gmra.mrb[60].mxu0 %vm652_vm4, %v1329_v61 }
 0x7b7   : > { %1543 = vmatprep.mubr.bf16.mxu0 %v4046_v14 }
 0x7be   : > { %2753 = vmatmul.mubr.msk.bf16.gmra.mrb[64].mxu0 %vm652_vm4, %v1330_v16 }
 0x7bf   : > { %1553 = vmatprep.mubr.bf16.mxu0 %v4046_v14 }
 0x7c6   : > { %2754 = vmatmul.mubr.msk.bf16.gmra.mrb[68].mxu0 %vm652_vm4, %v1331_v62 }
 0x7c7   : > { %1563 = vmatprep.mubr.bf16.mxu0 %v4046_v14 }
 0x7ce   : > { %2755 = vmatmul.mubr.msk.bf16.gmra.mrb[72].mxu0 %vm652_vm4, %v1332_v1 }
 0x7cf   : > { %2386 = vmatprep.mubr.bf16.mxu0 %v4046_v14 }
 0x829   : > { %v3483_v2 = vpop.f32.mrb[12].mxu0 }
 0x82a   : > { %v1417_v63 = vpop.f32.mrb[13].mxu0 }
 0x82b   : > { %v1671_v0 = vmax.f32 %v3483_v2, %v1417_v63  ;;  %v3486_v3 = vpop.f32.mrb[14].mxu0 }
 0x82c   : > { %v1421_v4 = vpop.f32.mrb[15].mxu0 }
 0x82d   : > { %v1674_v5 = vmax.f32 %v3486_v3, %v1421_v4  ;;  %1672 = vmax.xlane.f32.xlu0 %v1671_v0 }
 0x82f   : > { %1675 = vmax.xlane.f32.xlu1 %v1674_v5 }
 0x831   : > { %v3489_v6 = vpop.f32.mrb[16].mxu0 }
 0x832   : > { %v1427_v7 = vpop.f32.mrb[17].mxu0 }
 0x833   : > { %v1677_v8 = vmax.f32 %v3489_v6, %v1427_v7  ;;  %v3492_v9 = vpop.f32.mrb[18].mxu0 }
 0x834   : > { %v1431_v10 = vpop.f32.mrb[19].mxu0 }
 0x835   : > { %v1680_v11 = vmax.f32 %v3492_v9, %v1431_v10  ;;  %1678 = vmax.xlane.f32.xlu0 %v1677_v8 }
 0x837   : > { %1681 = vmax.xlane.f32.xlu1 %v1680_v11 }
 0x839   : > { %v3495_v12 = vpop.f32.mrb[20].mxu0 }
 0x83a   : > { %v1437_v13 = vpop.f32.mrb[21].mxu0 }
 0x83b   : > { %v1683_v23 = vmax.f32 %v3495_v12, %v1437_v13  ;;  %v3498_v15 = vpop.f32.mrb[22].mxu0 }
 0x83c   : > { %v1441_v18 = vpop.f32.mrb[23].mxu0 }
 0x83d   : > { %v1686_v20 = vmax.f32 %v3498_v15, %v1441_v18  ;;  %1684 = vmax.xlane.f32.xlu0 %v1683_v23 }
 0x83f   : > { %1687 = vmax.xlane.f32.xlu1 %v1686_v20 }
 0x841   : > { %v3501_v35 = vpop.f32.mrb[24].mxu0 }
 0x842   : > { %v1447_v21 = vpop.f32.mrb[25].mxu0 }
 0x843   : > { %v1689_v22 = vmax.f32 %v3501_v35, %v1447_v21  ;;  %v3504_v24 = vpop.f32.mrb[26].mxu0 }
 0x844   : > { %v1451_v25 = vpop.f32.mrb[27].mxu0 }
 0x845   : > { %v1692_v26 = vmax.f32 %v3504_v24, %v1451_v25  ;;  %1690 = vmax.xlane.f32.xlu0 %v1689_v22 }
 0x847   : > { %1693 = vmax.xlane.f32.xlu1 %v1692_v26 }
 0x849   : > { %v3507_v27 = vpop.f32.mrb[28].mxu0 }
 0x84a   : > { %v1457_v31 = vpop.f32.mrb[29].mxu0 }
 0x84b   : > { %v1695_v28 = vmax.f32 %v3507_v27, %v1457_v31  ;;  %v3510_v29 = vpop.f32.mrb[30].mxu0 }
 0x84c   : > { %v1461_v30 = vpop.f32.mrb[31].mxu0 }
 0x84d   : > { %v1698_v32 = vmax.f32 %v3510_v29, %v1461_v30  ;;  %1696 = vmax.xlane.f32.xlu0 %v1695_v28 }
 0x84f   : > { %1699 = vmax.xlane.f32.xlu1 %v1698_v32 }
 0x851   : > { %v3513_v37 = vpop.f32.mrb[32].mxu0 }
 0x852   : > { %v1467_v33 = vpop.f32.mrb[33].mxu0 }
 0x853   : > { %v1701_v34 = vmax.f32 %v3513_v37, %v1467_v33  ;;  %v3516_v36 = vpop.f32.mrb[34].mxu0 }
 0x854   : > { %v1471_v38 = vpop.f32.mrb[35].mxu0 }
 0x855   : > { %v1704_v39 = vmax.f32 %v3516_v36, %v1471_v38  ;;  %1702 = vmax.xlane.f32.xlu0 %v1701_v34 }
 0x857   : > { %1705 = vmax.xlane.f32.xlu1 %v1704_v39 }
 0x859   : > { %v3519_v40 = vpop.f32.mrb[36].mxu0 }
 0x85a   : > { %v1477_v41 = vpop.f32.mrb[37].mxu0 }
 0x85b   : > { %v1707_v44 = vmax.f32 %v3519_v40, %v1477_v41  ;;  %v3522_v45 = vpop.f32.mrb[38].mxu0 }
 0x85c   : > { %v1481_v43 = vpop.f32.mrb[39].mxu0 }
 0x85d   : > { %v1710_v46 = vmax.f32 %v3522_v45, %v1481_v43  ;;  %1708 = vmax.xlane.f32.xlu0 %v1707_v44 }
 0x85f   : > { %1711 = vmax.xlane.f32.xlu1 %v1710_v46 }
 0x861   : > { %v3525_v53 = vpop.f32.mrb[40].mxu0 }
 0x862   : > { %v1487_v54 = vpop.f32.mrb[41].mxu0 }
 0x863   : > { %v1713_v47 = vmax.f32 %v3525_v53, %v1487_v54  ;;  %v3528_v42 = vpop.f32.mrb[42].mxu0 }
 0x864   : > { %v1491_v48 = vpop.f32.mrb[43].mxu0 }
 0x865   : > { %v1716_v49 = vmax.f32 %v3528_v42, %v1491_v48  ;;  %1714 = vmax.xlane.f32.xlu0 %v1713_v47 }
 0x867   : > { %1717 = vmax.xlane.f32.xlu1 %v1716_v49 }
 0x869   : > { %v3531_v51 = vpop.f32.mrb[44].mxu0 }
 0x86a   : > { %v3533_v52 = vpop.f32.mrb[45].mxu0 }
 0x86b   : > { %v3535_v55 = vpop.f32.mrb[46].mxu0  ;;  %v1719_v56 = vmax.f32 %v3531_v51, %v3533_v52 }
 0x86c   : > { %v3539_v57 = vpop.f32.mrb[47].mxu0 }
 0x86d   : > { %1720 = vmax.xlane.f32.xlu0 %v1719_v56  ;;  %v1722_v60 = vmax.f32 %v3535_v55, %v3539_v57 }
 0x86f   : > { %1723 = vmax.xlane.f32.xlu1 %v1722_v60 }
 0x871   : > { %v3543_v61 = vpop.f32.mrb[48].mxu0 }
 0x872   : > { %v3545_v16 = vpop.f32.mrb[49].mxu0 }
 0x873   : > { %v3547_v62 = vpop.f32.mrb[50].mxu0  ;;  %v1725_v1 = vmax.f32 %v3543_v61, %v3545_v16 }
 0x874   : > { %v3551_v63 = vpop.f32.mrb[51].mxu0 }
 0x875   : > { %1726 = vmax.xlane.f32.xlu0 %v1725_v1  ;;  %v1728_v0 = vmax.f32 %v3547_v62, %v3551_v63 }
 0x877   : > { %1729 = vmax.xlane.f32.xlu1 %v1728_v0 }
 0x879   : > { %v3555_v4 = vpop.f32.mrb[52].mxu0 }
 0x87a   : > { %v3557_v5 = vpop.f32.mrb[53].mxu0 }
 0x87b   : > { %v3559_v7 = vpop.f32.mrb[54].mxu0  ;;  %v1731_v8 = vmax.f32 %v3555_v4, %v3557_v5 }
 0x87c   : > { %v3563_v10 = vpop.f32.mrb[55].mxu0 }
 0x87d   : > { %1732 = vmax.xlane.f32.xlu0 %v1731_v8  ;;  %v1734_v11 = vmax.f32 %v3559_v7, %v3563_v10 }
 0x87f   : > { %1735 = vmax.xlane.f32.xlu1 %v1734_v11 }
 0x881   : > { %v3567_v13 = vpop.f32.mrb[56].mxu0 }
 0x882   : > { %v3569_v23 = vpop.f32.mrb[57].mxu0 }
 0x883   : > { %v3571_v18 = vpop.f32.mrb[58].mxu0  ;;  %v1737_v20 = vmax.f32 %v3567_v13, %v3569_v23 }
 0x884   : > { %v3575_v21 = vpop.f32.mrb[59].mxu0 }
 0x885   : > { %1738 = vmax.xlane.f32.xlu0 %v1737_v20  ;;  %v1740_v22 = vmax.f32 %v3571_v18, %v3575_v21  ;;  %v2878_v20 = vld [vmem:[%s4030_s8 + $0x8] sm:$0xff]  }
 0x886   : > { %2739 = vmatmul.mubr.msk.bf16.gmra.mrb[12].mxu1 %vm1087_vm2, %v2878_v20  ;;  %v1576_v20 = vadd.s32 8, %v3429_v50 }
 0x887   : > { %1741 = vmax.xlane.f32.xlu1 %v1740_v22  ;;  %v2324_v22 = vld [vmem:[%s4033_s11] sm:$0xf] }
 0x888   : > { %2759 = vmatmul.mubr.msk.bf16.vlgmr.msra.gmra.mrb[76].mxu0 %vm1087_vm2, %v2324_v22  ;;  %vm1609_vm7 = vcmp.lt.s32.totalorder %v3243_v17, %v1576_v20 }
 0x889   : > { %v3579_v25 = vpop.f32.mrb[60].mxu0  ;;  %2560 = vmatprep.mubr.bf16.mxu0 %v4046_v14 }
 0x88a   : > { %v3581_v26 = vpop.f32.mrb[61].mxu0 }
 0x88b   : > { %v3583_v31 = vpop.f32.mrb[62].mxu0  ;;  %v1743_v28 = vmax.f32 %v3579_v25, %v3581_v26 }
 0x88c   : > { %v3587_v30 = vpop.f32.mrb[63].mxu0 }
 0x88d   : > { %v1746_v32 = vmax.f32 %v3583_v31, %v3587_v30 }
 0x88f   : > { %1747 = vmax.xlane.f32.xlu1 %v1746_v32 }
 0x891   : > { %v3591_v33 = vpop.f32.mrb[64].mxu0 }
 0x892   : > { %v3593_v34 = vpop.f32.mrb[65].mxu0 }
 0x893   : > { %v3595_v38 = vpop.f32.mrb[66].mxu0 }
 0x894   : > { %4058 = vst [vmem:[#allocation4_spill] sm:$0xff] %v3595_v38  ;;  %v3599_v41 = vpop.f32.mrb[67].mxu0 }
 0x895   : > { %4059 = vst [vmem:[#allocation5_spill] sm:$0xff] %v3599_v41  ;;  %v1752_v44 = vmax.f32 %v3595_v38, %v3599_v41 }
 0x899   : > { %v3603_v43 = vpop.f32.mrb[68].mxu0 }
 0x89a   : > { %v3605_v46 = vpop.f32.mrb[69].mxu0 }
 0x89b   : > { %v3607_v54 = vpop.f32.mrb[70].mxu0 }
 0x89c   : > { %v3611_v48 = vpop.f32.mrb[71].mxu0 }
 0x8a1   : > { %v3615_v56 = vpop.f32.mrb[72].mxu0 }
 0x8a2   : > { %v3617_v60 = vpop.f32.mrb[73].mxu0 }
 0x8a3   : > { %v3619_v1 = vpop.f32.mrb[74].mxu0 }
 0x8a4   : > { %v3623_v8 = vpop.f32.mrb[75].mxu0 }
 0x8ba   : > { %v1673_v32 = vpop.xlane.xlu0 %1672 }
 0x8bb   : > { %v1767_v0 = vsub.f32 %v3483_v2, %v1673_v32 }
 0x8bc   : > { %v1676_v47 = vpop.xlane.xlu1 %1675 }
 0x8bd   : > { %v1831_v49 = vmul.f32 1.442695, %v1767_v0  ;;  %v1769_v11 = vsub.f32 %v3486_v3, %v1676_v47 }
 0x8bf   : > { %2915 = vpow2.f32 %v1831_v49  ;;  %v1835_v39 = vmul.f32 1.442695, %v1769_v11 }
 0x8c1   : > { %2917 = vpow2.f32 %v1835_v39 }
 0x8c2   : > { %v1679_v59 = vpop.xlane.xlu0 %1678 }
 0x8c3   : > { %v1771_v58 = vsub.f32 %v3489_v6, %v1679_v59 }
 0x8c4   : > { %v1682_v41 = vpop.xlane.xlu1 %1681 }
 0x8c5   : > { %v1839_v38 = vmul.f32 1.442695, %v1771_v58  ;;  %v1773_v22 = vsub.f32 %v3492_v9, %v1682_v41  ;;  %v1577_v58 = vadd.s32 16, %v3429_v50 }
 0x8c7   : > { %2919 = vpow2.f32 %v1839_v38  ;;  %v1843_v14 = vmul.f32 1.442695, %v1773_v22  ;;  %vm1611_vm8 = vcmp.lt.s32.totalorder %v3243_v17, %v1577_v58  ;;  %v1579_v22 = vadd.s32 32, %v3429_v50 }
 0x8c8   : > { %v4061_v58 = vmax.f32 %v3607_v54, %v3611_v48 }
 0x8c9   : > { %v2916_v2 = vpop.eup %2915  ;;  %2921 = vpow2.f32 %v1843_v14  ;;  %v1578_v14 = vadd.s32 24, %v3429_v50  ;;  %vm1615_vm10 = vcmp.lt.s32.totalorder %v3243_v17, %v1579_v22 }
 0x8ca   : > { %v1685_v3 = vpop.xlane.xlu0 %1684  ;;  %v3644_v39 = vsel %vm1607_vm6, %v2916_v2, 0.0 }
 0x8cb   : > { %v2918_v47 = vpop.eup %2917  ;;  %v1775_v59 = vsub.f32 %v3495_v12, %v1685_v3  ;;  %2024 = vadd.xlane.f32.xlu0 %v3644_v39  ;;  %vm1613_vm9 = vcmp.lt.s32.totalorder %v3243_v17, %v1578_v14  ;;  %v1581_v14 = vadd.s32 48, %v3429_v50 }
 0x8cc   : > { %v1688_v6 = vpop.xlane.xlu1 %1687  ;;  %v3649_v9 = vsel %vm1609_vm7, %v2918_v47, 0.0 }
 0x8cd   : > { %v1847_v38 = vmul.f32 1.442695, %v1775_v59  ;;  %v1777_v41 = vsub.f32 %v3498_v15, %v1688_v6  ;;  %2027 = vadd.xlane.f32.xlu1 %v3649_v9  ;;  %v4060_v59 = vmax.f32 %v3591_v33, %v3593_v34  ;;  %vm1619_vm12 = vcmp.lt.s32.totalorder %v3243_v17, %v1581_v14 }
 0x8cf   : > { %2923 = vpow2.f32 %v1847_v38  ;;  %v1851_v49 = vmul.f32 1.442695, %v1777_v41  ;;  %1744 = vmax.xlane.f32.xlu0 %v1743_v28 }
 0x8d1   : > { %v2920_v12 = vpop.eup %2919  ;;  %2925 = vpow2.f32 %v1851_v49  ;;  %1753 = vmax.xlane.f32.xlu1 %v1752_v44  ;;  %v1580_v44 = vadd.s32 40, %v3429_v50 }
 0x8d2   : > { %v1691_v0 = vpop.xlane.xlu0 %1690  ;;  %v3656_v11 = vsel %vm1611_vm8, %v2920_v12, 0.0 }
 0x8d3   : > { %v2922_v32 = vpop.eup %2921  ;;  %v1779_v15 = vsub.f32 %v3501_v35, %v1691_v0  ;;  %2030 = vadd.xlane.f32.xlu0 %v3656_v11  ;;  %vm1617_vm11 = vcmp.lt.s32.totalorder %v3243_v17, %v1580_v44 }
 0x8d4   : > { %v1694_v20 = vpop.xlane.xlu1 %1693  ;;  %v3661_v2 = vsel %vm1613_vm9, %v2922_v32, 0.0 }
 0x8d5   : > { %v1855_v28 = vmul.f32 1.442695, %v1779_v15  ;;  %v1781_v3 = vsub.f32 %v3504_v24, %v1694_v20  ;;  %2033 = vadd.xlane.f32.xlu1 %v3661_v2  ;;  %v1582_v15 = vadd.s32 56, %v3429_v50  ;;  %v4062_v20 = vmax.f32 %v3603_v43, %v3605_v46 }
 0x8d7   : > { %2927 = vpow2.f32 %v1855_v28  ;;  %v1859_v47 = vmul.f32 1.442695, %v1781_v3  ;;  %1750 = vmax.xlane.f32.xlu0 %v4060_v59  ;;  %v4063_v28 = vmax.f32 %v3619_v1, %v3623_v8  ;;  %vm1621_vm13 = vcmp.lt.s32.totalorder %v3243_v17, %v1582_v15 }
 0x8d8   : > { %v1583_v59 = vadd.s32 64, %v3429_v50 }
 0x8d9   : > { %v2924_v35 = vpop.eup %2923  ;;  %2929 = vpow2.f32 %v1859_v47  ;;  %1759 = vmax.xlane.f32.xlu1 %v4061_v58 }
 0x8da   : > { %v1697_v24 = vpop.xlane.xlu0 %1696  ;;  %v3674_v6 = vsel %vm1615_vm10, %v2924_v35, 0.0  ;;  %vm1623_vm14 = vcmp.lt.s32.totalorder %v3243_v17, %v1583_v59 }
 0x8db   : > { %v2926_v38 = vpop.eup %2925  ;;  %v1783_v41 = vsub.f32 %v3507_v27, %v1697_v24  ;;  %2036 = vadd.xlane.f32.xlu0 %v3674_v6 }
 0x8dc   : > { %v1700_v49 = vpop.xlane.xlu1 %1699  ;;  %v3679_v12 = vsel %vm1617_vm11, %v2926_v38, 0.0 }
 0x8dd   : > { %v1863_v0 = vmul.f32 1.442695, %v1783_v41  ;;  %v1785_v32 = vsub.f32 %v3510_v29, %v1700_v49  ;;  %2039 = vadd.xlane.f32.xlu1 %v3679_v12  ;;  %v1584_v41 = vadd.s32 72, %v3429_v50  ;;  %v4064_v49 = vmax.f32 %v3615_v56, %v3617_v60 }
 0x8df   : > { %2931 = vpow2.f32 %v1863_v0  ;;  %v1867_v22 = vmul.f32 1.442695, %v1785_v32  ;;  %1756 = vmax.xlane.f32.xlu0 %v4062_v20  ;;  %vm1625_vm15 = vcmp.lt.s32.totalorder %v3243_v17, %v1584_v41 }
 0x8e1   : > { %v2928_v27 = vpop.eup %2927  ;;  %2933 = vpow2.f32 %v1867_v22  ;;  %1765 = vmax.xlane.f32.xlu1 %v4063_v28  ;;  %v1585_v22 = vadd.s32 80, %v3429_v50 }
 0x8e2   : > { %v1703_v29 = vpop.xlane.xlu0 %1702  ;;  %v3692_v3 = vsel %vm1619_vm12, %v2928_v27, 0.0 }
 0x8e3   : > { %v2930_v44 = vpop.eup %2929  ;;  %v1787_v47 = vsub.f32 %v3513_v37, %v1703_v29  ;;  %2042 = vadd.xlane.f32.xlu0 %v3692_v3  ;;  %vm1627_vm0 = vcmp.lt.s32.totalorder %v3243_v17, %v1585_v22 }
 0x8e4   : > { %v1706_v35 = vpop.xlane.xlu1 %1705  ;;  %v3697_v58 = vsel %vm1621_vm13, %v2930_v44, 0.0  ;;  %v1586_v44 = vadd.s32 88, %v3429_v50 }
 0x8e5   : > { %v1871_v24 = vmul.f32 1.442695, %v1787_v47  ;;  %v1789_v38 = vsub.f32 %v3516_v36, %v1706_v35  ;;  %2045 = vadd.xlane.f32.xlu1 %v3697_v58 }
 0x8e6   : > { %vm1629_vm3 = vcmp.lt.s32.totalorder %v3243_v17, %v1586_v44 }
 0x8e7   : > { %2935 = vpow2.f32 %v1871_v24  ;;  %v1875_v14 = vmul.f32 1.442695, %v1789_v38  ;;  %1762 = vmax.xlane.f32.xlu0 %v4064_v49 }
 0x8e9   : > { %v2932_v37 = vpop.eup %2931  ;;  %2937 = vpow2.f32 %v1875_v14 }
 0x8ea   : > { %v1709_v0 = vpop.xlane.xlu0 %1708  ;;  %v3707_v32 = vsel %vm1623_vm14, %v2932_v37, 0.0 }
 0x8eb   : > { %v2934_v36 = vpop.eup %2933  ;;  %v1791_v15 = vsub.f32 %v3519_v40, %v1709_v0  ;;  %2048 = vadd.xlane.f32.xlu0 %v3707_v32  ;;  %v1588_v0 = vadd.s32 104, %v3429_v50 }
 0x8ec   : > { %v1712_v20 = vpop.xlane.xlu1 %1711  ;;  %v3712_v27 = vsel %vm1625_vm15, %v2934_v36, 0.0 }
 0x8ed   : > { %v1879_v28 = vmul.f32 1.442695, %v1791_v15  ;;  %v1793_v29 = vsub.f32 %v3522_v45, %v1712_v20  ;;  %2051 = vadd.xlane.f32.xlu1 %v3712_v27  ;;  %v1587_v45 = vadd.s32 96, %v3429_v50  ;;  %vm1633_vm6 = vcmp.lt.s32.totalorder %v3243_v17, %v1588_v0 }
 0x8ef   : > { %2939 = vpow2.f32 %v1879_v28  ;;  %v1883_v47 = vmul.f32 1.442695, %v1793_v29  ;;  %vm1631_vm5 = vcmp.lt.s32.totalorder %v3243_v17, %v1587_v45  ;;  %v1589_v29 = vadd.s32 112, %v3429_v50 }
 0x8f1   : > { %v2936_v59 = vpop.eup %2935  ;;  %2941 = vpow2.f32 %v1883_v47  ;;  %vm1635_vm7 = vcmp.lt.s32.totalorder %v3243_v17, %v1589_v29 }
 0x8f2   : > { %v1715_v40 = vpop.xlane.xlu0 %1714  ;;  %v3719_v35 = vsel %vm1627_vm0, %v2936_v59, 0.0  ;;  %v1590_v59 = vadd.s32 120, %v3429_v50 }
 0x8f3   : > { %v2938_v24 = vpop.eup %2937  ;;  %v1795_v38 = vsub.f32 %v3525_v53, %v1715_v40  ;;  %2054 = vadd.xlane.f32.xlu0 %v3719_v35 }
 0x8f4   : > { %v1718_v41 = vpop.xlane.xlu1 %1717  ;;  %v3724_v14 = vsel %vm1629_vm3, %v2938_v24, 0.0  ;;  %vm1637_vm8 = vcmp.lt.s32.totalorder %v3243_v17, %v1590_v59 }
 0x8f5   : > { %v1887_v49 = vmul.f32 1.442695, %v1795_v38  ;;  %v1797_v37 = vsub.f32 %v3528_v42, %v1718_v41  ;;  %2057 = vadd.xlane.f32.xlu1 %v3724_v14 }
 0x8f7   : > { %2943 = vpow2.f32 %v1887_v49  ;;  %v1891_v36 = vmul.f32 1.442695, %v1797_v37 }
 0x8f9   : > { %v2940_v15 = vpop.eup %2939  ;;  %2945 = vpow2.f32 %v1891_v36 }
 0x8fa   : > { %v1721_v53 = vpop.xlane.xlu0 %1720  ;;  %v3731_v22 = vsel %vm1631_vm5, %v2940_v15, 0.0 }
 0x8fb   : > { %v2942_v20 = vpop.eup %2941  ;;  %v1799_v28 = vsub.f32 %v3531_v51, %v1721_v53  ;;  %v1800_v42 = vsub.f32 %v3533_v52, %v1721_v53  ;;  %2060 = vadd.xlane.f32.xlu0 %v3731_v22  ;;  %v1591_v53 = vadd.s32 128, %v3429_v50 }
 0x8fc   : > { %v1724_v44 = vpop.xlane.xlu1 %1723  ;;  %v3737_v47 = vsel %vm1633_vm6, %v2942_v20, 0.0 }
 0x8fd   : > { %v1895_v40 = vmul.f32 1.442695, %v1799_v28  ;;  %v1897_v24 = vmul.f32 1.442695, %v1800_v42  ;;  %v1801_v38 = vsub.f32 %v3535_v55, %v1724_v44  ;;  %v1802_v45 = vsub.f32 %v3539_v57, %v1724_v44  ;;  %2063 = vadd.xlane.f32.xlu1 %v3737_v47 }
 0x8fe   : > { %vm1640_vm9 = vcmp.lt.s32.totalorder %v3248_v19, %v1591_v53 }
 0x8ff   : > { %2947 = vpow2.f32 %v1895_v40  ;;  %v1899_v51 = vmul.f32 1.442695, %v1801_v38  ;;  %v1901_v52 = vmul.f32 1.442695, %v1802_v45 }
 0x900   : > { %2949 = vpow2.f32 %v1897_v24 }
 0x901   : > { %v2944_v41 = vpop.eup %2943  ;;  %2951 = vpow2.f32 %v1899_v51 }
 0x902   : > { %2953 = vpow2.f32 %v1901_v52  ;;  %v1727_v49 = vpop.xlane.xlu0 %1726  ;;  %v3745_v37 = vsel %vm1635_vm7, %v2944_v41, 0.0  ;;  %v1593_v41 = vadd.s32 144, %v3429_v50 }
 0x903   : > { %v2946_v0 = vpop.eup %2945  ;;  %v1803_v55 = vsub.f32 %v3543_v61, %v1727_v49  ;;  %v1804_v57 = vsub.f32 %v3545_v16, %v1727_v49  ;;  %2066 = vadd.xlane.f32.xlu0 %v3745_v37  ;;  %v1592_v16 = vadd.s32 136, %v3429_v50 }
 0x904   : > { %v1730_v36 = vpop.xlane.xlu1 %1729  ;;  %v3750_v15 = vsel %vm1637_vm8, %v2946_v0, 0.0  ;;  %vm1644_vm11 = vcmp.lt.s32.totalorder %v3248_v19, %v1593_v41 }
 0x905   : > { %v1903_v20 = vmul.f32 1.442695, %v1803_v55  ;;  %v1905_v28 = vmul.f32 1.442695, %v1804_v57  ;;  %v1805_v17 = vsub.f32 %v3547_v62, %v1730_v36  ;;  %v1806_v42 = vsub.f32 %v3551_v63, %v1730_v36  ;;  %2069 = vadd.xlane.f32.xlu1 %v3750_v15 }
 0x906   : > { %vm1642_vm10 = vcmp.lt.s32.totalorder %v3248_v19, %v1592_v16 }
 0x907   : > { %2955 = vpow2.f32 %v1903_v20  ;;  %v1907_v29 = vmul.f32 1.442695, %v1805_v17  ;;  %v1909_v61 = vmul.f32 1.442695, %v1806_v42 }
 0x908   : > { %2957 = vpow2.f32 %v1905_v28 }
 0x909   : > { %v3758_v44 = vpop.eup %2947  ;;  %2959 = vpow2.f32 %v1907_v29 }
 0x90a   : > { %v2950_v59 = vpop.eup %2949  ;;  %2961 = vpow2.f32 %v1909_v61  ;;  %v1733_v40 = vpop.xlane.xlu0 %1732 }
 0x90b   : > { %v3760_v24 = vpop.eup %2951  ;;  %v1807_v62 = vsub.f32 %v3555_v4, %v1733_v40  ;;  %v1808_v63 = vsub.f32 %v3557_v5, %v1733_v40  ;;  %v3764_v38 = vsel %vm1640_vm9, %v2950_v59, 0.0  ;;  %v1594_v5 = vadd.s32 152, %v3429_v50 }
 0x90c   : > { %v2954_v45 = vpop.eup %2953  ;;  %v1736_v51 = vpop.xlane.xlu1 %1735  ;;  %v2071_v52 = vadd.f32 %v3758_v44, %v3764_v38 }
 0x90d   : > { %v1911_v49 = vmul.f32 1.442695, %v1807_v62  ;;  %v1913_v0 = vmul.f32 1.442695, %v1808_v63  ;;  %v1809_v55 = vsub.f32 %v3559_v7, %v1736_v51  ;;  %v1810_v57 = vsub.f32 %v3563_v10, %v1736_v51 }
 0x90e   : > { %2072 = vadd.xlane.f32.xlu0 %v2071_v52  ;;  %v3772_v4 = vsel %vm1642_vm10, %v2954_v45, 0.0  ;;  %vm1646_vm12 = vcmp.lt.s32.totalorder %v3248_v19, %v1594_v5  ;;  %v1595_v62 = vadd.s32 160, %v3429_v50 }
 0x90f   : > { %2963 = vpow2.f32 %v1911_v49  ;;  %v1915_v36 = vmul.f32 1.442695, %v1809_v55  ;;  %v1917_v53 = vmul.f32 1.442695, %v1810_v57  ;;  %v2074_v20 = vadd.f32 %v3760_v24, %v3772_v4 }
 0x910   : > { %2965 = vpow2.f32 %v1913_v0  ;;  %vm1648_vm13 = vcmp.lt.s32.totalorder %v3248_v19, %v1595_v62 }
 0x911   : > { %v3778_v28 = vpop.eup %2955  ;;  %2967 = vpow2.f32 %v1915_v36  ;;  %2075 = vadd.xlane.f32.xlu1 %v2074_v20  ;;  %v1597_v20 = vadd.s32 176, %v3429_v50 }
 0x912   : > { %v2958_v7 = vpop.eup %2957  ;;  %2969 = vpow2.f32 %v1917_v53  ;;  %v1739_v10 = vpop.xlane.xlu0 %1738 }
 0x913   : > { %v3780_v17 = vpop.eup %2959  ;;  %v1811_v42 = vsub.f32 %v3567_v13, %v1739_v10  ;;  %v1812_v29 = vsub.f32 %v3569_v23, %v1739_v10  ;;  %v3784_v61 = vsel %vm1644_vm11, %v2958_v7, 0.0  ;;  %v1596_v23 = vadd.s32 168, %v3429_v50 }
 0x914   : > { %v2962_v16 = vpop.eup %2961  ;;  %v1742_v59 = vpop.xlane.xlu1 %1741  ;;  %v2077_v40 = vadd.f32 %v3778_v28, %v3784_v61  ;;  %vm1652_vm15 = vcmp.lt.s32.totalorder %v3248_v19, %v1597_v20 }
 0x915   : > { %v1919_v63 = vmul.f32 1.442695, %v1811_v42  ;;  %v1921_v45 = vmul.f32 1.442695, %v1812_v29  ;;  %v1813_v51 = vsub.f32 %v3571_v18, %v1742_v59  ;;  %v1814_v52 = vsub.f32 %v3575_v21, %v1742_v59 }
 0x916   : > { %2078 = vadd.xlane.f32.xlu0 %v2077_v40  ;;  %v3792_v13 = vsel %vm1646_vm12, %v2962_v16, 0.0  ;;  %vm1650_vm14 = vcmp.lt.s32.totalorder %v3248_v19, %v1596_v23  ;;  %v1598_v16 = vadd.s32 184, %v3429_v50 }
 0x917   : > { %2971 = vpow2.f32 %v1919_v63  ;;  %v1923_v41 = vmul.f32 1.442695, %v1813_v51  ;;  %v1925_v49 = vmul.f32 1.442695, %v1814_v52  ;;  %v2080_v0 = vadd.f32 %v3780_v17, %v3792_v13 }
 0x918   : > { %2973 = vpow2.f32 %v1921_v45  ;;  %vm1654_vm0 = vcmp.lt.s32.totalorder %v3248_v19, %v1598_v16 }
 0x919   : > { %v3798_v55 = vpop.eup %2963  ;;  %2975 = vpow2.f32 %v1923_v41  ;;  %2081 = vadd.xlane.f32.xlu1 %v2080_v0  ;;  %v1600_v41 = vadd.s32 200, %v3429_v50 }
 0x91a   : > { %v2966_v18 = vpop.eup %2965  ;;  %2977 = vpow2.f32 %v1925_v49 }
 0x91b   : > { %v3801_v21 = vpop.eup %2967  ;;  %v3803_v57 = vsel %vm1648_vm13, %v2966_v18, 0.0  ;;  %vm1658_vm3 = vcmp.lt.s32.totalorder %v3248_v19, %v1600_v41 }
 0x91c   : > { %v2970_v5 = vpop.eup %2969  ;;  %v1748_v36 = vpop.xlane.xlu1 %1747  ;;  %v2083_v53 = vadd.f32 %v3798_v55, %v3803_v57 }
 0x91d   : > { %v1817_v7 = vsub.f32 %v3583_v31, %v1748_v36  ;;  %v1818_v10 = vsub.f32 %v3587_v30, %v1748_v36  ;;  %v3810_v42 = vsel %vm1650_vm14, %v2970_v5, 0.0 }
 0x91e   : > { %2084 = vadd.xlane.f32.xlu0 %v2083_v53  ;;  %v2086_v29 = vadd.f32 %v3801_v21, %v3810_v42 }
 0x91f   : > { %v1931_v59 = vmul.f32 1.442695, %v1817_v7  ;;  %v1933_v40 = vmul.f32 1.442695, %v1818_v10 }
 0x920   : > { %2087 = vadd.xlane.f32.xlu1 %v2086_v29 }
 0x921   : > { %v3816_v62 = vpop.eup %2971  ;;  %2979 = vpow2.f32 %v1931_v59 }
 0x922   : > { %v2974_v63 = vpop.eup %2973  ;;  %2981 = vpow2.f32 %v1933_v40 }
 0x923   : > { %v3819_v31 = vpop.eup %2975  ;;  %v3821_v30 = vsel %vm1652_vm15, %v2974_v63, 0.0 }
 0x924   : > { %v2978_v45 = vpop.eup %2977  ;;  %v2089_v51 = vadd.f32 %v3816_v62, %v3821_v30 }
 0x925   : > { %v3825_v52 = vsel %vm1654_vm0, %v2978_v45, 0.0  ;;  %v4066_v45 = vld [vmem:[#allocation4_spill] sm:$0xff] }
 0x926   : > { %2090 = vadd.xlane.f32.xlu0 %v2089_v51  ;;  %v2092_v23 = vadd.f32 %v3819_v31, %v3825_v52 }
 0x928   : > { %2093 = vadd.xlane.f32.xlu1 %v2092_v23  ;;  %v4067_v23 = vld [vmem:[#allocation5_spill] sm:$0xff] }
 0x92b   : > { %v3831_v49 = vpop.eup %2979 }
 0x92c   : > { %4065 = vst [vmem:[#allocation6_spill] sm:$0xff] %v3831_v49  ;;  %v2982_v0 = vpop.eup %2981 }
 0x92d   : > { %v3833_v18 = vsel %vm1658_vm3, %v2982_v0, 0.0 }
 0x92e   : > { %v2098_v5 = vadd.f32 %v3831_v49, %v3833_v18 }
 0x930   : > { %2099 = vadd.xlane.f32.xlu1 %v2098_v5 }
 0x958   : > { %v2025_v36 = vpop.xlane.xlu0 %2024 }
 0x959   : > { %v2119_v53 = vadd.f32 1e-06, %v2025_v36 }
 0x95a   : > { %v2028_v20 = vpop.xlane.xlu1 %2027 }
 0x95b   : > { %2983 = vrcp.f32 %v2119_v53  ;;  %v2120_v7 = vadd.f32 1e-06, %v2028_v20 }
 0x95c   : > { %v1745_v10 = vpop.xlane.xlu0 %1744 }
 0x95d   : > { %2985 = vrcp.f32 %v2120_v7  ;;  %v1815_v29 = vsub.f32 %v3579_v25, %v1745_v10  ;;  %v1816_v16 = vsub.f32 %v3581_v26, %v1745_v10 }
 0x95e   : > { %v1754_v59 = vpop.xlane.xlu1 %1753 }
 0x95f   : > { %v1927_v40 = vmul.f32 1.442695, %v1815_v29  ;;  %v1929_v63 = vmul.f32 1.442695, %v1816_v16  ;;  %v1821_v51 = vsub.f32 %v4066_v45, %v1754_v59  ;;  %v1822_v41 = vsub.f32 %v4067_v23, %v1754_v59 }
 0x960   : > { %v2031_v0 = vpop.xlane.xlu0 %2030  ;;  %v1599_v16 = vadd.s32 192, %v3429_v50  ;;  %v1602_v59 = vadd.s32 216, %v3429_v50 }
 0x961   : > { %2987 = vpow2.f32 %v1927_v40  ;;  %v1939_v5 = vmul.f32 1.442695, %v1821_v51  ;;  %v1941_v36 = vmul.f32 1.442695, %v1822_v41  ;;  %v2121_v49 = vadd.f32 1e-06, %v2031_v0 }
 0x962   : > { %2989 = vpow2.f32 %v1929_v63  ;;  %v2034_v53 = vpop.xlane.xlu1 %2033  ;;  %vm1656_vm5 = vcmp.lt.s32.totalorder %v3248_v19, %v1599_v16  ;;  %vm1662_vm6 = vcmp.lt.s32.totalorder %v3248_v19, %v1602_v59 }
 0x963   : > { %2991 = vpow2.f32 %v1939_v5  ;;  %v2122_v20 = vadd.f32 1e-06, %v2034_v53 }
 0x964   : > { %2993 = vpow2.f32 %v1941_v36  ;;  %v1751_v25 = vpop.xlane.xlu0 %1750 }
 0x965   : > { %v2984_v7 = vpop.eup %2983  ;;  %2995 = vrcp.f32 %v2121_v49  ;;  %v1819_v26 = vsub.f32 %v3591_v33, %v1751_v25  ;;  %v1820_v10 = vsub.f32 %v3593_v34, %v1751_v25 }
 0x966   : > { %2997 = vrcp.f32 %v2122_v20  ;;  %v1760_v29 = vpop.xlane.xlu1 %1759  ;;  %v2184_v0 = vmul.f32 0.0, %v2984_v7  ;;  %v2183_v33 = vmul.f32 %v2984_v7, %v3644_v39  ;;  %v1601_v39 = vadd.s32 208, %v3429_v50 }
 0x967   : > { %v2986_v40 = vpop.eup %2985  ;;  %v1935_v45 = vmul.f32 1.442695, %v1819_v26  ;;  %v1937_v63 = vmul.f32 1.442695, %v1820_v10  ;;  %v1825_v51 = vsub.f32 %v3607_v54, %v1760_v29  ;;  %v1826_v23 = vsub.f32 %v3611_v48, %v1760_v29 }
 0x968   : > { %v2037_v41 = vpop.xlane.xlu0 %2036  ;;  %v2186_v49 = vmul.f32 0.0, %v2986_v40  ;;  %v2185_v34 = vmul.f32 %v2986_v40, %v3649_v9  ;;  %vm1660_vm7 = vcmp.lt.s32.totalorder %v3248_v19, %v1601_v39 }
 0x969   : > { %2999 = vpow2.f32 %v1935_v45  ;;  %v1947_v5 = vmul.f32 1.442695, %v1825_v51  ;;  %v1949_v36 = vmul.f32 1.442695, %v1826_v23  ;;  %v2123_v53 = vadd.f32 1e-06, %v2037_v41 }
 0x96a   : > { %3001 = vpow2.f32 %v1937_v63  ;;  %v2040_v20 = vpop.xlane.xlu1 %2039  ;;  %v2250_v25 = vpack.c.bf16 %v2186_v49, %v2184_v0  ;;  %v2249_v26 = vpack.c.bf16 %v2185_v34, %v2183_v33 }
 0x96b   : > { %v3850_v54 = vpop.eup %2987  ;;  %3003 = vpow2.f32 %v1947_v5  ;;  %v2124_v48 = vadd.f32 1e-06, %v2040_v20 }
 0x96c   : > { %v2990_v10 = vpop.eup %2989  ;;  %3005 = vpow2.f32 %v1949_v36  ;;  %v1757_v29 = vpop.xlane.xlu0 %1756  ;;  %2281 = vmatprep.subr.bf16.mxu1 %v2250_v25 }
 0x96d   : > { %v3854_v9 = vpop.eup %2991  ;;  %3007 = vrcp.f32 %v2123_v53  ;;  %v1823_v7 = vsub.f32 %v3603_v43, %v1757_v29  ;;  %v1824_v40 = vsub.f32 %v3605_v46, %v1757_v29  ;;  %2282 = vmatpush1.bf16.xpose.msra.mxu1 %v2249_v26  ;;  %v3858_v16 = vsel %vm1656_vm5, %v2990_v10, 0.0 }
 0x96e   : > { %v2994_v45 = vpop.eup %2993  ;;  %3009 = vrcp.f32 %v2124_v48  ;;  %v3860_v63 = vpop.xlane.xlu1 %1765  ;;  %v2095_v51 = vadd.f32 %v3850_v54, %v3858_v16  ;;  %v1604_v46 = vadd.s32 232, %v3429_v50 }
 0x96f   : > { %v2996_v23 = vpop.eup %2995  ;;  %v1943_v41 = vmul.f32 1.442695, %v1823_v7  ;;  %v1945_v0 = vmul.f32 1.442695, %v1824_v40  ;;  %v3866_v43 = vsel %vm1662_vm6, %v2994_v45, 0.0 }
 0x970   : > { %v2998_v49 = vpop.eup %2997  ;;  %2096 = vadd.xlane.f32.xlu0 %v2095_v51  ;;  %v2043_v33 = vpop.xlane.xlu0 %2042  ;;  %v2188_v5 = vmul.f32 0.0, %v2996_v23  ;;  %v2187_v36 = vmul.f32 %v2996_v23, %v3656_v11  ;;  %v2104_v53 = vadd.f32 %v3854_v9, %v3866_v43  ;;  %vm1666_vm8 = vcmp.lt.s32.totalorder %v3248_v19, %v1604_v46 }
 0x971   : > { %3011 = vpow2.f32 %v1943_v41  ;;  %v2125_v34 = vadd.f32 1e-06, %v2043_v33  ;;  %v2190_v25 = vmul.f32 0.0, %v2998_v49  ;;  %v2189_v26 = vmul.f32 %v2998_v49, %v3661_v2 }
 0x972   : > { %3013 = vpow2.f32 %v1945_v0  ;;  %v2046_v20 = vpop.xlane.xlu1 %2045  ;;  %2105 = vadd.xlane.f32.xlu1 %v2104_v53  ;;  %v1603_v0 = vadd.s32 224, %v3429_v50 }
 0x973   : > { %v3874_v59 = vpop.eup %2999  ;;  %v2126_v48 = vadd.f32 1e-06, %v2046_v20  ;;  %v2252_v7 = vpack.c.bf16 %v2190_v25, %v2188_v5  ;;  %v2251_v40 = vpack.c.bf16 %v2189_v26, %v2187_v36  ;;  %3015 = vrcp.f32 %v2125_v34 }
 0x974   : > { %v3002_v10 = vpop.eup %3001  ;;  %v1763_v29 = vpop.xlane.xlu0 %1762  ;;  %vm1664_vm9 = vcmp.lt.s32.totalorder %v3248_v19, %v1603_v0 }
 0x975   : > { %v3877_v45 = vpop.eup %3003  ;;  %v1827_v11 = vsub.f32 %v3615_v56, %v1763_v29  ;;  %v1828_v51 = vsub.f32 %v3617_v60, %v1763_v29  ;;  %v3883_v2 = vsel %vm1660_vm7, %v3002_v10, 0.0  ;;  %3017 = vrcp.f32 %v2126_v48  ;;  %2283 = vmatprep.subr.bf16.mxu1 %v2252_v7 }
 0x976   : > { %v3006_v23 = vpop.eup %3005  ;;  %v2101_v41 = vadd.f32 %v3874_v59, %v3883_v2  ;;  %2284 = vmatpush1.bf16.xpose.msra.mxu1 %v2251_v40 }
 0x977   : > { %v3008_v49 = vpop.eup %3007  ;;  %v1951_v33 = vmul.f32 1.442695, %v1827_v11  ;;  %v1953_v46 = vmul.f32 1.442695, %v1828_v51  ;;  %v3888_v34 = vsel %vm1666_vm8, %v3006_v23, 0.0 }
 0x978   : > { %v3010_v56 = vpop.eup %3009  ;;  %2102 = vadd.xlane.f32.xlu0 %v2101_v41  ;;  %v2049_v60 = vpop.xlane.xlu0 %2048  ;;  %v2110_v39 = vadd.f32 %v3877_v45, %v3888_v34  ;;  %v2192_v5 = vmul.f32 0.0, %v3008_v49  ;;  %v2191_v36 = vmul.f32 %v3008_v49, %v3674_v6 }
 0x979   : > { %3019 = vpow2.f32 %v1951_v33  ;;  %v2127_v53 = vadd.f32 1e-06, %v2049_v60  ;;  %v2194_v20 = vmul.f32 0.0, %v3010_v56  ;;  %v2193_v25 = vmul.f32 %v3010_v56, %v3679_v12 }
 0x97a   : > { %3021 = vpow2.f32 %v1953_v46  ;;  %2111 = vadd.xlane.f32.xlu1 %v2110_v39  ;;  %v2052_v26 = vpop.xlane.xlu1 %2051  ;;  %v1605_v12 = vadd.s32 240, %v3429_v50 }
 0x97b   : > { %v3895_v48 = vpop.eup %3011  ;;  %3023 = vrcp.f32 %v2127_v53  ;;  %v2128_v10 = vadd.f32 1e-06, %v2052_v26  ;;  %v2254_v29 = vpack.c.bf16 %v2194_v20, %v2192_v5  ;;  %v2253_v7 = vpack.c.bf16 %v2193_v25, %v2191_v36 }
 0x97c   : > { %v3014_v40 = vpop.eup %3013  ;;  %vm1668_vm10 = vcmp.lt.s32.totalorder %v3248_v19, %v1605_v12 }
 0x97d   : > { %3025 = vrcp.f32 %v2128_v10  ;;  %2285 = vmatprep.subr.bf16.mxu1 %v2254_v29  ;;  %v3897_v6 = vsel %vm1664_vm9, %v3014_v40, 0.0  ;;  %v3016_v51 = vpop.eup %3015  ;;  %v1267_v29 = vld [vmem:[%s4032_s10 + $0x10] sm:$0xff] }
 0x97e   : > { %v2107_v11 = vadd.f32 %v3895_v48, %v3897_v6  ;;  %2286 = vmatpush1.bf16.xpose.msra.mxu1 %v2253_v7  ;;  %v2196_v0 = vmul.f32 0.0, %v3016_v51  ;;  %v2195_v46 = vmul.f32 %v3016_v51, %v3692_v3 }
 0x97f   : > { %v3018_v23 = vpop.eup %3017 }
 0x980   : > { %2108 = vadd.xlane.f32.xlu0 %v2107_v11  ;;  %v2055_v41 = vpop.xlane.xlu0 %2054  ;;  %v2198_v33 = vmul.f32 0.0, %v3018_v23  ;;  %v2197_v56 = vmul.f32 %v3018_v23, %v3697_v58 }
 0x981   : > { %v2129_v49 = vadd.f32 1e-06, %v2055_v41 }
 0x982   : > { %v2058_v60 = vpop.xlane.xlu1 %2057  ;;  %v2256_v36 = vpack.c.bf16 %v2198_v33, %v2196_v0  ;;  %v2255_v53 = vpack.c.bf16 %v2197_v56, %v2195_v46 }
 0x983   : > { %v3905_v39 = vpop.eup %3019  ;;  %3027 = vrcp.f32 %v2129_v49  ;;  %v2130_v5 = vadd.f32 1e-06, %v2058_v60 }
 0x984   : > { %v3022_v20 = vpop.eup %3021  ;;  %2287 = vmatprep.subr.bf16.mxu1 %v2256_v36 }
 0x985   : > { %v3024_v25 = vpop.eup %3023  ;;  %3029 = vrcp.f32 %v2130_v5  ;;  %v3907_v26 = vsel %vm1668_vm10, %v3022_v20, 0.0 }
 0x986   : > { %v2113_v3 = vadd.f32 %v3905_v39, %v3907_v26  ;;  %2288 = vmatpush1.bf16.xpose.msra.mxu1 %v2255_v53  ;;  %v2200_v7 = vmul.f32 0.0, %v3024_v25  ;;  %v2199_v51 = vmul.f32 %v3024_v25, %v3707_v32 }
 0x987   : > { %v3026_v10 = vpop.eup %3025 }
 0x988   : > { %2114 = vadd.xlane.f32.xlu0 %v2113_v3  ;;  %v2061_v58 = vpop.xlane.xlu0 %2060  ;;  %v2202_v40 = vmul.f32 0.0, %v3026_v10  ;;  %v2201_v11 = vmul.f32 %v3026_v10, %v3712_v27  ;;  %v2787_v10 = vld [vmem:[%s4031_s9 + $0x8] sm:$0xff]  }
 0x989   : > { %v2131_v12 = vadd.f32 1e-06, %v2061_v58 }
 0x98a   : > { %v2064_v23 = vpop.xlane.xlu1 %2063  ;;  %v2258_v41 = vpack.c.bf16 %v2202_v40, %v2200_v7  ;;  %v2257_v49 = vpack.c.bf16 %v2201_v11, %v2199_v51  ;;  %v2785_v7 = vunpack.c.l.bf16 %v2787_v10 }
 0x98b   : > { %3031 = vrcp.f32 %v2131_v12  ;;  %1281 = vperm.xlu1 %2833, %v1267_v29   ;;  %v2132_v0 = vadd.f32 1e-06, %v2064_v23  ;;  %v1830_v29 = vsub.f32 %v3623_v8, %v3860_v63 }
 0x98c   : > { %2289 = vmatprep.subr.bf16.mxu1 %v2258_v41 }
 0x98d   : > { %v3028_v33 = vpop.eup %3027  ;;  %3033 = vrcp.f32 %v2132_v0  ;;  %v1957_v23 = vmul.f32 1.442695, %v1830_v29  ;;  %v2513_v29 = vld [vmem:[%s4038_s16] sm:$0xff] }
 0x98e   : > { %2290 = vmatpush1.bf16.xpose.msra.mxu1 %v2257_v49  ;;  %v2204_v60 = vmul.f32 0.0, %v3028_v33  ;;  %v2203_v53 = vmul.f32 %v3028_v33, %v3719_v35  ;;  %v1829_v35 = vsub.f32 %v3619_v1, %v3860_v63 }
 0x98f   : > { %v3030_v46 = vpop.eup %3029 }
 0x990   : > { %v2067_v56 = vpop.xlane.xlu0 %2066  ;;  %v2206_v5 = vmul.f32 0.0, %v3030_v46  ;;  %v2205_v36 = vmul.f32 %v3030_v46, %v3724_v14  ;;  %v2786_v14 = vunpack.c.h.bf16 %v2787_v10  ;;  %v1955_v8 = vmul.f32 1.442695, %v1829_v35  ;;  %v3938_v10 = vpop.f32.mrb[76].mxu0 }
 0x991   : > { %v2133_v27 = vadd.f32 1e-06, %v2067_v56 }
 0x992   : > { %v2070_v32 = vpop.xlane.xlu1 %2069  ;;  %v2260_v20 = vpack.c.bf16 %v2206_v5, %v2204_v60  ;;  %v2259_v3 = vpack.c.bf16 %v2205_v36, %v2203_v53  ;;  %v2869_v49 = vpack.i.bf16 %v2786_v14, %v2785_v7  ;;  %v3931_v53 = vpop.f32.mrb[12].mxu1 }
 0x993   : > { %3035 = vrcp.f32 %v2133_v27  ;;  %v2134_v25 = vadd.f32 1e-06, %v2070_v32 }
 0x994   : > { %2291 = vmatprep.subr.bf16.mxu1 %v2260_v20  ;;  %v3934_v20 = vpop.f32.mrb[13].mxu1 }
 0x995   : > { %v3032_v58 = vpop.eup %3031  ;;  %3037 = vrcp.f32 %v2134_v25 }
 0x996   : > { %2292 = vmatpush1.bf16.xpose.msra.mxu1 %v2259_v3  ;;  %v2208_v11 = vmul.f32 0.0, %v3032_v58  ;;  %v2207_v41 = vmul.f32 %v3032_v58, %v3731_v22  ;;  %3039 = vpow2.f32 %v1957_v23  ;;  %v3936_v3 = vpop.f32.mrb[14].mxu1 }
 0x997   : > { %v3034_v40 = vpop.eup %3033  ;;  %v3944_v14 = vpop.f32.mrb[15].mxu1 }
 0x998   : > { %v2210_v12 = vmul.f32 0.0, %v3034_v40  ;;  %v2209_v51 = vmul.f32 %v3034_v40, %v3737_v47  ;;  %v2339_v47 = vld [vmem:[%s4034_s12] sm:$0xff] }
 0x99a   : > { %v2262_v0 = vpack.c.bf16 %v2210_v12, %v2208_v11  ;;  %v2261_v46 = vpack.c.bf16 %v2209_v51, %v2207_v41 }
 0x99b   : > { %v2073_v33 = vpop.xlane.xlu0 %2072 }
 0x99c   : > { %v2135_v56 = vadd.f32 1e-06, %v2073_v33  ;;  %2293 = vmatprep.subr.bf16.mxu1 %v2262_v0 }
 0x99d   : > { %v3036_v60 = vpop.eup %3035 }
 0x99e   : > { %3041 = vrcp.f32 %v2135_v56  ;;  %v2076_v5 = vpop.xlane.xlu1 %2075  ;;  %2870 = vperm.xlu0 %2817, %v2869_v49   ;;  %2294 = vmatpush1.bf16.xpose.msra.mxu1 %v2261_v46  ;;  %v2212_v22 = vmul.f32 0.0, %v3036_v60  ;;  %v2211_v32 = vmul.f32 %v3036_v60, %v3745_v37  ;;  %v3946_v37 = vpop.f32.mrb[77].mxu0 }
 0x99f   : > { %v3038_v1 = vpop.eup %3037  ;;  %v2136_v63 = vadd.f32 1e-06, %v2076_v5  ;;  %3043 = vpow2.f32 %v1955_v8  ;;  %v2392_v35 = vpop.f32.mrb[78].mxu0 }
 0x9a0   : > { %v2214_v36 = vmul.f32 0.0, %v3038_v1  ;;  %v2213_v27 = vmul.f32 %v3038_v1, %v3750_v15  ;;  %v1606_v15 = vadd.s32 248, %v3429_v50  ;;  %v2393_v12 = vpop.f32.mrb[79].mxu0  ;;  %v3040_v51 = vpop.eup %3039 }
 0x9a1   : > { %3045 = vrcp.f32 %v2136_v63 }
 0x9a2   : > { %2342 = vperm.xlu0 %2817, %v2339_v47   ;;  %v2264_v25 = vpack.c.bf16 %v2214_v36, %v2212_v22  ;;  %v2263_v7 = vpack.c.bf16 %v2213_v27, %v2211_v32  ;;  %vm1670_vm11 = vcmp.lt.s32.totalorder %v3248_v19, %v1606_v15 }
 0x9a3   : > { %v2079_v58 = vpop.xlane.xlu0 %2078  ;;  %v3951_v50 = vsel %vm1670_vm11, %v3040_v51, 0.0 }
 0x9a4   : > { %v2137_v40 = vadd.f32 1e-06, %v2079_v58  ;;  %2295 = vmatprep.subr.bf16.mxu1 %v2264_v25 }
 0x9a6   : > { %3047 = vrcp.f32 %v2137_v40  ;;  %v2082_v11 = vpop.xlane.xlu1 %2081  ;;  %2516 = vperm.xlu0 %2817, %v2513_v29   ;;  %2296 = vmatpush1.bf16.xpose.msra.mxu1 %v2263_v7 }
 0x9a7   : > { %v2138_v23 = vadd.f32 1e-06, %v2082_v11 }
 0x9a8   : > { %v3042_v41 = vpop.eup %3041 }
 0x9a9   : > { %3049 = vrcp.f32 %v2138_v23  ;;  %v3949_v0 = vpop.eup %3043  ;;  %v2216_v46 = vmul.f32 %v3042_v41, %v3764_v38  ;;  %v2215_v60 = vmul.f32 %v3042_v41, %v3758_v44 }
 0x9aa   : > { %v2116_v19 = vadd.f32 %v3949_v0, %v3951_v50 }
 0x9ab   : > { %v3046_v49 = vpop.eup %3045  ;;  %v2085_v33 = vpop.xlane.xlu0 %2084 }
 0x9ac   : > { %v2139_v8 = vadd.f32 1e-06, %v2085_v33  ;;  %v2218_v56 = vmul.f32 %v3046_v49, %v3772_v4  ;;  %v2217_v5 = vmul.f32 %v3046_v49, %v3760_v24 }
 0x9ad   : > { %v2088_v1 = vpop.xlane.xlu1 %2087 }
 0x9ae   : > { %3051 = vrcp.f32 %v2139_v8  ;;  %v2140_v63 = vadd.f32 1e-06, %v2088_v1  ;;  %v2266_v47 = vpack.c.bf16 %v2218_v56, %v2216_v46  ;;  %v2265_v22 = vpack.c.bf16 %v2217_v5, %v2215_v60 }
 0x9af   : > { %2117 = vadd.xlane.f32.xlu1 %v2116_v19 }
 0x9b0   : > { %v3048_v36 = vpop.eup %3047  ;;  %3053 = vrcp.f32 %v2140_v63  ;;  %2297 = vmatprep.subr.bf16.mxu1 %v2266_v47 }
 0x9b1   : > { %2298 = vmatpush1.bf16.xpose.msra.mxu1 %v2265_v22  ;;  %v2220_v4 = vmul.f32 %v3048_v36, %v3784_v61  ;;  %v2219_v32 = vmul.f32 %v3048_v36, %v3778_v28 }
 0x9b3   : > { %v3050_v38 = vpop.eup %3049  ;;  %v2091_v27 = vpop.xlane.xlu0 %2090 }
 0x9b4   : > { %v2141_v44 = vadd.f32 1e-06, %v2091_v27  ;;  %v2222_v24 = vmul.f32 %v3050_v38, %v3792_v13  ;;  %v2221_v25 = vmul.f32 %v3050_v38, %v3780_v17  ;;  %v1268_v17 = vld [vmem:[%s4032_s10 + $0x18] sm:$0xff]  ;;  %v4068_v27 = vld [vmem:[#allocation6_spill] sm:$0xff] }
 0x9b5   : > { %v2094_v58 = vpop.xlane.xlu1 %2093 }
 0x9b6   : > { %3055 = vrcp.f32 %v2141_v44  ;;  %v2142_v29 = vadd.f32 1e-06, %v2094_v58  ;;  %v2268_v7 = vpack.c.bf16 %v2222_v24, %v2220_v4  ;;  %v2267_v15 = vpack.c.bf16 %v2221_v25, %v2219_v32 }
 0x9b8   : > { %v3052_v40 = vpop.eup %3051  ;;  %3057 = vrcp.f32 %v2142_v29  ;;  %2299 = vmatprep.subr.bf16.mxu1 %v2268_v7 }
 0x9b9   : > { %2300 = vmatpush1.bf16.xpose.msra.mxu1 %v2267_v15  ;;  %v2224_v11 = vmul.f32 %v3052_v40, %v3803_v57  ;;  %v2223_v13 = vmul.f32 %v3052_v40, %v3798_v55  ;;  %v2434_v57 = vld [vmem:[%s4036_s14] sm:$0xff] }
 0x9ba   : > { %v3054_v35 = vpop.eup %3053 }
 0x9bb   : > { %v2226_v61 = vmul.f32 %v3054_v35, %v3810_v42  ;;  %v2225_v28 = vmul.f32 %v3054_v35, %v3801_v21 }
 0x9bd   : > { %v2270_v12 = vpack.c.bf16 %v2226_v61, %v2224_v11  ;;  %v2269_v51 = vpack.c.bf16 %v2225_v28, %v2223_v13  ;;  %v2100_v8 = vpop.xlane.xlu1 %2099 }
 0x9be   : > { %v2144_v56 = vadd.f32 1e-06, %v2100_v8 }
 0x9bf   : > { %2301 = vmatprep.subr.bf16.mxu1 %v2270_v12 }
 0x9c0   : > { %v3056_v23 = vpop.eup %3055  ;;  %1286 = vperm.xlu1 %2833, %v1268_v17   ;;  %3059 = vrcp.f32 %v2144_v56 }
 0x9c1   : > { %2302 = vmatpush1.bf16.xpose.msra.mxu1 %v2269_v51  ;;  %v2228_v42 = vmul.f32 %v3056_v23, %v3821_v30  ;;  %v2227_v21 = vmul.f32 %v3056_v23, %v3816_v62 }
 0x9c2   : > { %v3058_v41 = vpop.eup %3057 }
 0x9c3   : > { %v2230_v55 = vmul.f32 %v3058_v41, %v3825_v52  ;;  %v2229_v49 = vmul.f32 %v3058_v41, %v3819_v31  ;;  %v4069_v41 = vld [vmem:[#allocation2_spill] sm:$0xff] }
 0x9c4   : > { %2437 = vperm.xlu1 %2833, %v2434_v57  }
 0x9c5   : > { %v2272_v33 = vpack.c.bf16 %v2230_v55, %v2228_v42  ;;  %v2271_v46 = vpack.c.bf16 %v2229_v49, %v2227_v21  ;;  %v4070_v55 = vld [vmem:[#allocation3_spill] sm:$0xff] }
 0x9c7   : > { %2303 = vmatprep.subr.bf16.mxu1 %v2272_v33 }
 0x9c9   : > { %2304 = vmatpush1.bf16.xpose.msra.mxu1 %v2271_v46 }
 0x9ca   : > { %v3060_v62 = vpop.eup %3059 }
 0x9cb   : > { %v2234_v36 = vmul.f32 %v3060_v62, %v3833_v18  ;;  %v2233_v4 = vmul.f32 %v3060_v62, %v4068_v27 }
 0x9fd   : > { %v2097_v60 = vpop.xlane.xlu0 %2096 }
 0x9fe   : > { %v2143_v5 = vadd.f32 1e-06, %v2097_v60 }
 0x9ff   : > { %v2106_v1 = vpop.xlane.xlu1 %2105 }
 0xa00   : > { %3061 = vrcp.f32 %v2143_v5  ;;  %v2146_v19 = vadd.f32 1e-06, %v2106_v1 }
 0xa02   : > { %3063 = vrcp.f32 %v2146_v19 }
 0xa05   : > { %v2103_v30 = vpop.xlane.xlu0 %2102 }
 0xa06   : > { %v2145_v52 = vadd.f32 1e-06, %v2103_v30 }
 0xa07   : > { %v2112_v63 = vpop.xlane.xlu1 %2111 }
 0xa08   : > { %3065 = vrcp.f32 %v2145_v52  ;;  %v2148_v47 = vadd.f32 1e-06, %v2112_v63 }
 0xa0a   : > { %v3062_v31 = vpop.eup %3061  ;;  %3067 = vrcp.f32 %v2148_v47 }
 0xa0b   : > { %v2232_v22 = vmul.f32 %v3062_v31, %v3858_v16  ;;  %v2231_v38 = vmul.f32 %v3062_v31, %v3850_v54  ;;  %v1282_v23 = vpop.permute.xlu1 %1281 }
 0xa0c   : > { %v3064_v58 = vpop.eup %3063 }
 0xa0d   : > { %v2109_v44 = vpop.xlane.xlu0 %2108  ;;  %v2274_v24 = vpack.c.bf16 %v2234_v36, %v2232_v22  ;;  %v2273_v32 = vpack.c.bf16 %v2233_v4, %v2231_v38  ;;  %v2238_v16 = vmul.f32 %v3064_v58, %v3866_v43  ;;  %v2237_v54 = vmul.f32 %v3064_v58, %v3854_v9 }
 0xa0e   : > { %v2147_v25 = vadd.f32 1e-06, %v2109_v44  ;;  %v4071_v22 = vmov 0  }
 0xa0f   : > { %2305 = vmatprep.subr.bf16.mxu1 %v2274_v24 }
 0xa10   : > { %3069 = vrcp.f32 %v2147_v25  ;;  %2306 = vmatpush1.bf16.xpose.msra.mxu1 %v2273_v32 }
 0xa12   : > { %v3066_v29 = vpop.eup %3065 }
 0xa13   : > { %v2236_v7 = vmul.f32 %v3066_v29, %v3883_v2  ;;  %v2235_v18 = vmul.f32 %v3066_v29, %v3874_v59 }
 0xa14   : > { %v3068_v35 = vpop.eup %3067 }
 0xa15   : > { %v2276_v15 = vpack.c.bf16 %v2238_v16, %v2236_v7  ;;  %v2275_v40 = vpack.c.bf16 %v2237_v54, %v2235_v18  ;;  %v2242_v13 = vmul.f32 %v3068_v35, %v3888_v34  ;;  %v2241_v2 = vmul.f32 %v3068_v35, %v3877_v45  ;;  %v2115_v59 = vpop.xlane.xlu0 %2114 }
 0xa16   : > { %v2149_v57 = vadd.f32 1e-06, %v2115_v59 }
 0xa17   : > { %2307 = vmatprep.subr.bf16.mxu1 %v2276_v15 }
 0xa18   : > { %2308 = vmatpush1.bf16.xpose.msra.mxu1 %v2275_v40  ;;  %3071 = vrcp.f32 %v2149_v57 }
 0xa1a   : > { %v3070_v11 = vpop.eup %3069 }
 0xa1b   : > { %v2240_v61 = vmul.f32 %v3070_v11, %v3897_v6  ;;  %v2239_v28 = vmul.f32 %v3070_v11, %v3895_v48 }
 0xa1d   : > { %v2278_v12 = vpack.c.bf16 %v2242_v13, %v2240_v61  ;;  %v2277_v43 = vpack.c.bf16 %v2241_v2, %v2239_v28  ;;  %v2871_v9 = vpop.permute.xlu0 %2870 }
 0xa1e   : > { %v2872_v17 = vunpack.i.l.bf16 %v2871_v9  ;;  %v2873_v51 = vunpack.i.h.bf16 %v2871_v9 }
 0xa1f   : > { %2309 = vmatprep.subr.bf16.mxu1 %v2278_v12  ;;  %v2407_v12 = vld [vmem:[%s4035_s13] sm:$0xf] }
 0xa20   : > { %2310 = vmatpush1.bf16.xpose.msra.mxu1 %v2277_v43  ;;  %v1192_v42 = vmul.f32 %v2872_v17, %v4069_v41  ;;  %v1193_v6 = vmul.f32 %v2872_v17, %v4070_v55  ;;  %v1194_v34 = vmul.f32 %v2873_v51, %v4069_v41  ;;  %v1195_v48 = vmul.f32 %v2873_v51, %v4070_v55 }
 0xa21   : > { %v2343_v43 = vpop.permute.xlu0 %2342 }
 0xa22   : > { %v1257_v45 = vadd.f32 %v3931_v53, %v1192_v42  ;;  %v1259_v49 = vadd.f32 %v3934_v20, %v1193_v6  ;;  %v1261_v46 = vadd.f32 %v3936_v3, %v1194_v34  ;;  %v1263_v8 = vadd.f32 %v3944_v14, %v1195_v48  ;;  %v3072_v63 = vpop.eup %3071 }
 0xa23   : > { %v2244_v53 = vmul.f32 %v3072_v63, %v3907_v26  ;;  %v2243_v31 = vmul.f32 %v3072_v63, %v3905_v39  ;;  %v2389_v59 = vadd.f32 %v3938_v10, %v2343_v43  ;;  %v2391_v9 = vadd.f32 %v3946_v37, %v2343_v43 }
 0xa24   : > { %v1293_v60 = vadd.f32 %v1282_v23, %v1257_v45  ;;  %v1294_v5 = vadd.f32 %v1282_v23, %v1259_v49 }
 0xa25   : > { %v2397_v17 = vmin.f32 %v2389_v59, 0.0  ;;  %v2398_v51 = vmin.f32 %v2391_v9, 0.0  ;;  %vm2396_vm3 = vcmp.gt.f32.partialorder %v2391_v9, 0.0 }
 0xa27   : > { %v2399_v23 = vmul.f32 1.442695, %v2397_v17  ;;  %v2401_v57 = vmul.f32 1.442695, %v2398_v51 }
 0xa3c   : > { %v2118_v21 = vpop.xlane.xlu1 %2117 }
 0xa3d   : > { %v2150_v33 = vadd.f32 1e-06, %v2118_v21 }
 0xa3f   : > { %3073 = vrcp.f32 %v2150_v33 }
 0xa40   : > { %v1287_v56 = vpop.permute.xlu1 %1286 }
 0xa41   : > { %v1295_v1 = vadd.f32 %v1287_v56, %v1261_v46  ;;  %v1296_v19 = vadd.f32 %v1287_v56, %v1263_v8 }
 0xa43   : > { %v2247_v30 = vpack.c.bf16 %v1295_v1, %v1293_v60  ;;  %v2248_v52 = vpack.c.bf16 %v1296_v19, %v1294_v5 }
 0xa44   : > { %v2438_v41 = vpop.permute.xlu1 %2437 }
 0xa45   : > { %2313 = vmatprep.mubr.bf16.mxu1 %v2248_v52 }
 0xa49   : > { %v3074_v62 = vpop.eup %3073 }
 0xa4a   : > { %v2246_v20 = vmul.f32 %v3074_v62, %v3951_v50  ;;  %v2245_v3 = vmul.f32 %v3074_v62, %v3949_v0 }
 0xa4c   : > { %v2280_v14 = vpack.c.bf16 %v2246_v20, %v2244_v53  ;;  %v2279_v47 = vpack.c.bf16 %v2245_v3, %v2243_v31 }
 0xa4e   : > { %2311 = vmatprep.subr.bf16.mxu1 %v2280_v14 }
 0xa4f   : > { %2312 = vmatpush1.bf16.xpose.msra.mxu1 %v2279_v47 }
 0xa56   : > { %2314 = vmatmul.mubr.bf16.vlgmr.msra.gmra.mrb[16].mxu1 %v2247_v30 }
 0xa57   : > { %2475 = vmatprep.mubr.bf16.mxu1 %v4071_v22 }
 0xb29   : > { %v2315_v36 = vpop.f32.mrb[16].mxu1 }
 0xb2a   : > { %v2412_v38 = vmin.f32 %v2315_v36, 0.0  ;;  %v2317_v27 = vpop.f32.mrb[17].mxu1  ;;  %vm2408_vm12 = vcmp.gt.f32.partialorder %v2315_v36, 0.0 }
 0xb2b   : > { %v2413_v4 = vmin.f32 %v2317_v27, 0.0  ;;  %v2319_v44 = vpop.f32.mrb[18].mxu1  ;;  %vm2409_vm14 = vcmp.gt.f32.partialorder %v2317_v27, 0.0 }
 0xb2c   : > { %v2416_v24 = vmul.f32 1.442695, %v2412_v38  ;;  %v2414_v26 = vmin.f32 %v2319_v44, 0.0  ;;  %v2321_v32 = vpop.f32.mrb[19].mxu1  ;;  %vm2410_vm13 = vcmp.gt.f32.partialorder %v2319_v44, 0.0 }
 0xb2d   : > { %v2418_v50 = vmul.f32 1.442695, %v2413_v4  ;;  %v2415_v25 = vmin.f32 %v2321_v32, 0.0  ;;  %vm2411_vm15 = vcmp.gt.f32.partialorder %v2321_v32, 0.0 }
 0xb2e   : > { %3075 = vpow2.f32 %v2416_v24  ;;  %v2420_v39 = vmul.f32 1.442695, %v2414_v26 }
 0xb2f   : > { %3077 = vpow2.f32 %v2418_v50  ;;  %v2422_v0 = vmul.f32 1.442695, %v2415_v25  ;;  %v2496_v50 = vld [vmem:[%s4037_s15] sm:$0xf]  ;;  %v2517_v25 = vpop.permute.xlu0 %2516 }
 0xb30   : > { %3079 = vpow2.f32 %v2420_v39 }
 0xb31   : > { %3081 = vpow2.f32 %v2422_v0 }
 0xb32   : > { %3083 = vpow2.f32 %v2399_v23 }
 0xb33   : > { %3085 = vpow2.f32 %v2401_v57 }
 0xb38   : > { %v3076_v58 = vpop.eup %3075 }
 0xb39   : > { %v3078_v29 = vpop.eup %3077  ;;  %v2762_v7 = vadd.f32 -1.0, %v3076_v58 }
 0xb3a   : > { %v3080_v16 = vpop.eup %3079  ;;  %v2763_v18 = vadd.f32 -1.0, %v3078_v29 }
 0xb3b   : > { %v3082_v54 = vpop.eup %3081  ;;  %v2764_v15 = vadd.f32 -1.0, %v3080_v16  ;;  %v2428_v35 = vsel %vm2408_vm12, %v2315_v36, %v2762_v7 }
 0xb3c   : > { %v2765_v40 = vadd.f32 -1.0, %v3082_v54  ;;  %v2429_v61 = vsel %vm2409_vm14, %v2317_v27, %v2763_v18  ;;  %v3084_v10 = vpop.eup %3083 }
 0xb3d   : > { %v2430_v11 = vsel %vm2410_vm13, %v2319_v44, %v2764_v15  ;;  %v3086_v37 = vpop.eup %3085  ;;  %v2760_v8 = vadd.f32 -1.0, %v3084_v10 }
 0xb3e   : > { %v2432_v13 = vpack.c.bf16 %v2430_v11, %v2428_v35  ;;  %v2431_v28 = vsel %vm2411_vm15, %v2321_v32, %v2765_v40  ;;  %v2761_v60 = vadd.f32 -1.0, %v3086_v37 }
 0xb3f   : > { %v2433_v2 = vpack.c.bf16 %v2431_v28, %v2429_v61 }
 0xb40   : > { %v2406_v63 = vsel %vm2396_vm3, %v2391_v9, %v2761_v60 }
 0xb41   : > { %2443 = vmatprep.subr.bf16.mxu1 %v2433_v2 }
 0xb42   : > { %2444 = vmatpush1.bf16.msra.mxu1 %v2432_v13 }
 0xb45   : > { %2766 = vmatmul.mubr.msk.bf16.vlgmr.msra.gmra.mrb[20].mxu1 %vm652_vm4, %v2407_v12  ;;  %vm2395_vm4 = vcmp.gt.f32.partialorder %v2389_v59, 0.0 }
 0xb46   : > { %v2405_v30 = vsel %vm2395_vm4, %v2389_v59, %v2760_v8 }
 0xc18   : > { %v2477_v42 = vpop.f32.mrb[20].mxu1 }
 0xc19   : > { %v2478_v55 = vadd.f32 %v2477_v42, %v2438_v41  ;;  %v2479_v6 = vpop.f32.mrb[21].mxu1 }
 0xc1a   : > { %v2480_v34 = vadd.f32 %v2479_v6, %v2438_v41  ;;  %v2481_v48 = vpop.f32.mrb[22].mxu1 }
 0xc1b   : > { %v2486_v21 = vmin.f32 %v2478_v55, 0.0  ;;  %v2482_v45 = vpop.f32.mrb[23].mxu1  ;;  %vm2484_vm0 = vcmp.gt.f32.partialorder %v2478_v55, 0.0 }
 0xc1c   : > { %v2487_v49 = vmin.f32 %v2480_v34, 0.0  ;;  %vm2485_vm5 = vcmp.gt.f32.partialorder %v2480_v34, 0.0 }
 0xc1d   : > { %v2488_v33 = vmul.f32 1.442695, %v2486_v21 }
 0xc1e   : > { %v2490_v46 = vmul.f32 1.442695, %v2487_v49 }
 0xc1f   : > { %3087 = vpow2.f32 %v2488_v33 }
 0xc20   : > { %3089 = vpow2.f32 %v2490_v46 }
 0xc29   : > { %v3088_v56 = vpop.eup %3087 }
 0xc2a   : > { %v3090_v5 = vpop.eup %3089  ;;  %v2767_v1 = vadd.f32 -1.0, %v3088_v56 }
 0xc2b   : > { %v2768_v19 = vadd.f32 -1.0, %v3090_v5 }
 0xc2c   : > { %v2494_v52 = vsel %vm2484_vm0, %v2478_v55, %v2767_v1 }
 0xc2d   : > { %v2497_v62 = vadd.f32 %v2494_v52, %v2405_v30  ;;  %v2495_v53 = vsel %vm2485_vm5, %v2480_v34, %v2768_v19 }
 0xc2e   : > { %v2498_v20 = vadd.f32 %v2495_v53, %v2406_v63 }
 0xc2f   : > { %v2501_v31 = vmin.f32 %v2497_v62, 0.0  ;;  %vm2499_vm6 = vcmp.gt.f32.partialorder %v2497_v62, 0.0 }
 0xc30   : > { %v2502_v3 = vmin.f32 %v2498_v20, 0.0  ;;  %vm2500_vm7 = vcmp.gt.f32.partialorder %v2498_v20, 0.0 }
 0xc31   : > { %v2503_v14 = vmul.f32 1.442695, %v2501_v31 }
 0xc32   : > { %v2505_v47 = vmul.f32 1.442695, %v2502_v3 }
 0xc33   : > { %3091 = vpow2.f32 %v2503_v14 }
 0xc34   : > { %3093 = vpow2.f32 %v2505_v47 }
 0xc3d   : > { %v3092_v22 = vpop.eup %3091 }
 0xc3e   : > { %v3094_v36 = vpop.eup %3093  ;;  %v2769_v38 = vadd.f32 -1.0, %v3092_v22 }
 0xc3f   : > { %v2770_v27 = vadd.f32 -1.0, %v3094_v36 }
 0xc40   : > { %v2509_v4 = vsel %vm2499_vm6, %v2497_v62, %v2769_v38 }
 0xc41   : > { %v2510_v44 = vsel %vm2500_vm7, %v2498_v20, %v2770_v27  ;;  %v2511_v24 = vpack.c.bf16 %v2509_v4, %v2509_v4 }
 0xc42   : > { %v2512_v26 = vpack.c.bf16 %v2510_v44, %v2510_v44 }
 0xc43   : > { %v2523_v32 = vsel %vm1091_vm1, %v2511_v24, 0 }
 0xc44   : > { %2771 = vmatprep.subr.msk.bf16.mxu0 %vm1091_vm1, %v2512_v26 }
 0xc45   : > { %2529 = vmatpush1.bf16.msra.mxu0 %v2523_v32 }
 0xc48   : > { %2772 = vmatmul.mubr.msk.bf16.vlgmr.msra.gmra.mrb[80].mxu0 %vm1087_vm2, %v2496_v50 }
 0xd1b   : > { %v2562_v39 = vpop.f32.mrb[80].mxu0 }
 0xd1c   : > { %v2563_v0 = vadd.f32 %v2562_v39, %v2517_v25  ;;  %v2564_v58 = vpop.f32.mrb[81].mxu0 }
 0xd1d   : > { %v2565_v29 = vadd.f32 %v2564_v58, %v2517_v25  ;;  %v2566_v7 = vpop.f32.mrb[82].mxu0 }
 0xd1e   : > { %v2571_v16 = vmin.f32 %v2563_v0, 0.0  ;;  %v2567_v18 = vpop.f32.mrb[83].mxu0  ;;  %vm2569_vm1 = vcmp.gt.f32.partialorder %v2563_v0, 0.0 }
 0xd1f   : > { %v2572_v54 = vmin.f32 %v2565_v29, 0.0  ;;  %vm2570_vm2 = vcmp.gt.f32.partialorder %v2565_v29, 0.0 }
 0xd20   : > { %v2573_v15 = vmul.f32 1.442695, %v2571_v16 }
 0xd21   : > { %v2575_v40 = vmul.f32 1.442695, %v2572_v54 }
 0xd22   : > { %3095 = vpow2.f32 %v2573_v15 }
 0xd23   : > { %3097 = vpow2.f32 %v2575_v40 }
 0xd2c   : > { %v3096_v35 = vpop.eup %3095 }
 0xd2d   : > { %v3098_v11 = vpop.eup %3097  ;;  %v2773_v61 = vadd.f32 -1.0, %v3096_v35 }
 0xd2e   : > { %v2774_v13 = vadd.f32 -1.0, %v3098_v11 }
 0xd2f   : > { %v2579_v28 = vsel %vm2569_vm1, %v2563_v0, %v2773_v61 }
 0xd30   : > { %2581 = vst [vmem:[%s565_s23] sm:$0xff] %v2579_v28  ;;  %v2580_v2 = vsel %vm2570_vm2, %v2565_v29, %v2774_v13 }
 0xd31   : > { %2582 = vst [vmem:[%s565_s23 + $0x8] sm:$0xff] %v2580_v2 }
 0xd32 PF: > { %s27_s24 = sadd.s32 1, %s3105_s24  }
 0xd33   : > { %p24_p4 = scmp.ge.s32.totalorder %s27_s24, 4  }
 0xd35   :  { %26 = sbr.rel (!%p24_p4) target bundleno = 3 (0x3), region = 125 }

</bundles_post_ra>
